<compile_context>
chip_gen: v6e
topology: v6e:2x2x1
jax: 0.10.0
libtpu: 0.0.40
codegen_flags: <defaults>
</compile_context>

<pallas_src>
import jax
import jax.numpy as jnp
from jax import lax
from jax.experimental import pallas as pl
from jax.experimental.pallas import tpu as pltpu


def _bottleneck_kernel(x_ref, w1_ref, s1_ref, b1_ref,
                       w2_ref, s2_ref, b2_ref,
                       w3_ref, s3_ref, b3_ref,
                       out_ref):
    """One TH-row output block of: 1x1+BN+ReLU -> 3x3+BN+ReLU -> 1x1+BN -> +res -> ReLU."""
    Hp, Wp, Cin = x_ref.shape          # padded image for one batch element (H+2, W+2, Cin)
    TH, W, Cout = out_ref.shape        # output row-block
    P = w1_ref.shape[1]                # planes

    j = pl.program_id(1)
    row0 = pl.multiple_of(j * TH, TH)  # start row of the halo window in padded coords

    # ---- conv1 (1x1) + bn1 + relu over the TH+2 halo rows (all W+2 padded cols) ----
    xw = x_ref[pl.ds(row0, TH + 2), :, :]                       # (TH+2, Wp, Cin) f32
    xm = xw.reshape((TH + 2) * Wp, Cin).astype(jnp.bfloat16)
    o1 = jnp.dot(xm, w1_ref[...], preferred_element_type=jnp.float32)
    o1 = jnp.maximum(o1 * s1_ref[...] + b1_ref[...], 0.0)
    o1 = o1.reshape(TH + 2, Wp, P)

    # Positions that correspond to conv2's zero padding (true image border) must be 0,
    # not relu(b1): zero only those rows/cols (no full scratch zero-fill needed).
    prow = row0 + lax.broadcasted_iota(jnp.int32, (TH + 2, Wp, 1), 0)
    pcol = lax.broadcasted_iota(jnp.int32, (TH + 2, Wp, 1), 1)
    interior = ((prow > 0) & (prow < Hp - 1) & (pcol > 0) & (pcol < Wp - 1))
    o1 = (o1 * interior.astype(o1.dtype)).astype(jnp.bfloat16)

    # ---- conv2 (3x3, stride=1, pad=1) + bn2 + relu : one im2col matmul, K = 9P ----
    taps = [o1[dy:dy + TH, dx:dx + W, :] for dy in range(3) for dx in range(3)]
    tap = jnp.concatenate(taps, axis=-1).reshape(TH * W, 9 * P)   # (TH*W, 9P) bf16
    o2 = jnp.dot(tap, w2_ref[...], preferred_element_type=jnp.float32)
    o2 = jnp.maximum(o2 * s2_ref[...] + b2_ref[...], 0.0)

    # ---- conv3 (1x1) + bn3 + residual + relu ----
    o3 = jnp.dot(o2.astype(jnp.bfloat16), w3_ref[...], preferred_element_type=jnp.float32)
    o3 = o3 * s3_ref[...] + b3_ref[...]
    # residual: re-read the interior x rows/cols from the VMEM-resident input (f32).
    xr = x_ref[pl.ds(row0 + 1, TH), pl.ds(1, W), :]               # (TH, W, Cin) f32
    out = jnp.maximum(o3.reshape(TH, W, Cout) + xr, 0.0)
    out_ref[...] = out.astype(out_ref.dtype)


def _pick_row_block(H, cap=8):
    for d in range(min(H, cap), 0, -1):
        if H % d == 0:
            return d
    return H


def bottleneck_forward_nhwc(x_nhwc, params, row_block=None):
    """x_nhwc: (N, H, W, Cin) float32 -> (N, H, W, Cout) float32 (NHWC hot path)."""
    N, H, W, Cin = x_nhwc.shape
    P = params["w1"].shape[1]
    Cout = params["w3"].shape[1]
    # Only the default Bottleneck construction (stride=1, downsample=None) is supported.
    assert Cin == Cout == 4 * P, "Bottleneck kernel requires inplanes == planes*4 (downsample=None)"
    # TODO(synk): stride=2 and the optional downsample 1x1-conv branch are not implemented.

    TH = _pick_row_block(H) if row_block is None else row_block
    assert H % TH == 0
    Hp, Wp = H + 2, W + 2

    # One-time boundary work (would live at the model boundary in a real network).
    x_pad = jnp.pad(x_nhwc.astype(jnp.float32), ((0, 0), (1, 1), (1, 1), (0, 0)))

    # Weights in MXU-friendly bf16; BN scale/shift stay f32.
    w1 = params["w1"].astype(jnp.bfloat16)                      # (Cin, P)
    w2 = params["w2"].reshape(9 * P, P).astype(jnp.bfloat16)    # (3,3,P,P) -> (9P, P), (dy,dx,cin) major->minor
    w3 = params["w3"].astype(jnp.bfloat16)                      # (P, Cout)
    s1, b1 = params["s1"], params["b1"]
    s2, b2 = params["s2"], params["b2"]
    s3, b3 = params["s3"], params["b3"]

    def _resident(a):
        nd = a.ndim
        return pl.BlockSpec(a.shape, lambda n, j: (0,) * nd)    # loaded once, stays in VMEM

    grid = (N, H // TH)
    in_specs = [
        # Full padded image of batch element n; constant over j -> fetched once per n.
        pl.BlockSpec((None, Hp, Wp, Cin), lambda n, j: (n, 0, 0, 0)),
        _resident(w1), _resident(s1), _resident(b1),
        _resident(w2), _resident(s2), _resident(b2),
        _resident(w3), _resident(s3), _resident(b3),
    ]
    out_specs = pl.BlockSpec((None, TH, W, Cout), lambda n, j: (n, j, 0, 0))

    return pl.pallas_call(
        _bottleneck_kernel,
        out_shape=jax.ShapeDtypeStruct((N, H, W, Cout), jnp.float32),
        grid=grid,
        in_specs=in_specs,
        out_specs=out_specs,
        compiler_params=pltpu.CompilerParams(
            dimension_semantics=("parallel", "arbitrary"),
            vmem_limit_bytes=48 * 1024 * 1024,
        ),
    )(x_pad, w1, s1, b1, w2, s2, b2, w3, s3, b3)


def bottleneck_forward(x_nchw, params):
    """PyTorch-layout wrapper: (N, Cin, H, W) -> (N, Cout, H, W)."""
    x_nhwc = jnp.transpose(x_nchw, (0, 2, 3, 1))
    out = bottleneck_forward_nhwc(x_nhwc, params)
    return jnp.transpose(out, (0, 3, 1, 2))


def _fold_bn(gamma, beta, mean, var, eps=1e-5):
    scale = gamma / jnp.sqrt(var + eps)
    shift = beta - mean * scale
    return scale.reshape(1, -1).astype(jnp.float32), shift.reshape(1, -1).astype(jnp.float32)


def make_params(key, inplanes, planes):
    """Deterministic synthetic parameters (shapes match Bottleneck.__init__, eval-mode BN folded)."""
    cout = planes * 4
    ks = jax.random.split(key, 12)
    w1 = jax.random.normal(ks[0], (inplanes, planes), jnp.float32) * 0.1        # 1x1: (Cin, P)
    w2 = jax.random.normal(ks[1], (3, 3, planes, planes), jnp.float32) * 0.1    # 3x3: HWIO
    w3 = jax.random.normal(ks[2], (planes, cout), jnp.float32) * 0.1            # 1x1: (P, Cout)
    g1, b1 = jax.random.normal(ks[3], (planes,)) * 0.1 + 1.0, jax.random.normal(ks[4], (planes,)) * 0.1
    m1, v1 = jax.random.normal(ks[5], (planes,)) * 0.1, jnp.abs(jax.random.normal(ks[6], (planes,))) * 0.1 + 1.0
    g2, b2 = jnp.ones((planes,)) * 1.05, jnp.ones((planes,)) * 0.02
    m2, v2 = jnp.ones((planes,)) * 0.01, jnp.ones((planes,)) * 0.9
    g3, b3 = jax.random.normal(ks[7], (cout,)) * 0.1 + 1.0, jax.random.normal(ks[8], (cout,)) * 0.1
    m3, v3 = jax.random.normal(ks[9], (cout,)) * 0.1, jnp.abs(jax.random.normal(ks[10], (cout,))) * 0.1 + 1.0
    s1, sh1 = _fold_bn(g1, b1, m1, v1)
    s2, sh2 = _fold_bn(g2, b2, m2, v2)
    s3, sh3 = _fold_bn(g3, b3, m3, v3)
    return {"w1": w1, "s1": s1, "b1": sh1,
            "w2": w2, "s2": s2, "b2": sh2,
            "w3": w3, "s3": s3, "b3": sh3}


def _reference(x_nchw, params):
    """Pure-JAX NHWC reference, with the same bf16 matmul-operand casting as the kernel."""
    x = jnp.transpose(x_nchw, (0, 2, 3, 1)).astype(jnp.float32)
    dn = ("NHWC", "HWIO", "NHWC")
    Cin, P = params["w1"].shape
    Cout = params["w3"].shape[1]

    def conv(inp, w, padding):
        return lax.conv_general_dilated(
            inp.astype(jnp.bfloat16), w.astype(jnp.bfloat16), (1, 1), padding,
            dimension_numbers=dn, preferred_element_type=jnp.float32)

    o = conv(x, params["w1"].reshape(1, 1, Cin, P), "VALID")
    o = jnp.maximum(o * params["s1"] + params["b1"], 0.0)
    o = conv(o, params["w2"], ((1, 1), (1, 1)))
    o = jnp.maximum(o * params["s2"] + params["b2"], 0.0)
    o = conv(o, params["w3"].reshape(1, 1, P, Cout), "VALID")
    o = o * params["s3"] + params["b3"]
    o = jnp.maximum(o + x, 0.0)
    return jnp.transpose(o, (0, 3, 1, 2))


if __name__ == "__main__":
    # Small but lane-dense shapes consistent with the module: inplanes = planes*4, stride=1.
    N, planes, H, W = 2, 32, 16, 16
    inplanes = planes * 4          # 128 -> Cout = 128 (full 128-lane output stores)

    key = jax.random.PRNGKey(0)
    kx, kp = jax.random.split(key)
    x = jax.random.normal(kx, (N, inplanes, H, W), jnp.float32)
    params = make_params(kp, inplanes, planes)

    out = jax.block_until_ready(bottleneck_forward(x, params))
    ref = jax.block_until_ready(_reference(x, params))

    assert out.shape == (N, inplanes, H, W)
    max_err = float(jnp.max(jnp.abs(out - ref)))
    assert jnp.allclose(out, ref, atol=2e-2, rtol=2e-2), max_err

    print("KERNEL_OK")
</pallas_src>

<mosaic_0001>
module attributes {stable_mosaic.version = 11 : i64} {
  func.func @_bottleneck_kernel(%arg0: i32, %arg1: i32, %arg2: memref<1x18x18x128xf32, #tpu.memory_space<vmem>>, %arg3: memref<128x32xbf16, #tpu.memory_space<vmem>>, %arg4: memref<1x32xf32, #tpu.memory_space<vmem>>, %arg5: memref<1x32xf32, #tpu.memory_space<vmem>>, %arg6: memref<288x32xbf16, #tpu.memory_space<vmem>>, %arg7: memref<1x32xf32, #tpu.memory_space<vmem>>, %arg8: memref<1x32xf32, #tpu.memory_space<vmem>>, %arg9: memref<32x128xbf16, #tpu.memory_space<vmem>>, %arg10: memref<1x128xf32, #tpu.memory_space<vmem>>, %arg11: memref<1x128xf32, #tpu.memory_space<vmem>>, %arg12: memref<1x8x16x128xf32, #tpu.memory_space<vmem>>) attributes {dimension_semantics = [#tpu.dimension_semantics<parallel>, #tpu.dimension_semantics<arbitrary>], iteration_bounds = array<i64: 2, 2>, scalar_prefetch = 0 : i64, scratch_operands = 0 : i64, tpu.core_type = #tpu.core_type<tc>, window_params = [{transform_indices = @transform_0, window_bounds = array<i64: 1, 18, 18, 128>}, {pipeline_mode = #tpu.pipeline_mode<synchronous>, transform_indices = @transform_1, window_bounds = array<i64: 128, 32>}, {pipeline_mode = #tpu.pipeline_mode<synchronous>, transform_indices = @transform_2, window_bounds = array<i64: 1, 32>}, {pipeline_mode = #tpu.pipeline_mode<synchronous>, transform_indices = @transform_3, window_bounds = array<i64: 1, 32>}, {pipeline_mode = #tpu.pipeline_mode<synchronous>, transform_indices = @transform_4, window_bounds = array<i64: 288, 32>}, {pipeline_mode = #tpu.pipeline_mode<synchronous>, transform_indices = @transform_5, window_bounds = array<i64: 1, 32>}, {pipeline_mode = #tpu.pipeline_mode<synchronous>, transform_indices = @transform_6, window_bounds = array<i64: 1, 32>}, {pipeline_mode = #tpu.pipeline_mode<synchronous>, transform_indices = @transform_7, window_bounds = array<i64: 32, 128>}, {pipeline_mode = #tpu.pipeline_mode<synchronous>, transform_indices = @transform_8, window_bounds = array<i64: 1, 128>}, {pipeline_mode = #tpu.pipeline_mode<synchronous>, transform_indices = @transform_9, window_bounds = array<i64: 1, 128>}, {transform_indices = @transform_10, window_bounds = array<i64: 1, 8, 16, 128>}]} {
    %c8_i32 = arith.constant 8 : i32
    %0 = arith.muli %arg1, %c8_i32 : i32
    %1 = tpu.assume_multiple %0, 8 : i32
    %c0 = arith.constant 0 : index
    %2 = arith.index_cast %1 : i32 to index
    %c0_0 = arith.constant 0 : index
    %c0_1 = arith.constant 0 : index
    %3 = vector.load %arg2[%c0, %2, %c0_0, %c0_1] : memref<1x18x18x128xf32, #tpu.memory_space<vmem>>, vector<1x10x18x128xf32>
    %4 = vector.shape_cast %3 : vector<1x10x18x128xf32> to vector<10x18x128xf32>
    %5 = vector.shape_cast %4 : vector<10x18x128xf32> to vector<180x128xf32>
    %6 = arith.truncf %5 : vector<180x128xf32> to vector<180x128xbf16>
    %c0_2 = arith.constant 0 : index
    %c0_3 = arith.constant 0 : index
    %7 = vector.load %arg3[%c0_2, %c0_3] : memref<128x32xbf16, #tpu.memory_space<vmem>>, vector<128x32xbf16>
    %cst = arith.constant dense<0.000000e+00> : vector<180x32xf32>
    %8 = tpu.matmul %6, %7, %cst {dimension_numbers = #tpu.dot_dimension_numbers<[1], [0], [0], [1], [0, 0, 1, 1], [], []>} : vector<180x128xbf16>, vector<128x32xbf16>, vector<180x32xf32> -> vector<180x32xf32>
    %c0_4 = arith.constant 0 : index
    %c0_5 = arith.constant 0 : index
    %9 = vector.load %arg4[%c0_4, %c0_5] : memref<1x32xf32, #tpu.memory_space<vmem>>, vector<1x32xf32>
    %10 = vector.broadcast %9 : vector<1x32xf32> to vector<180x32xf32>
    %11 = arith.mulf %8, %10 : vector<180x32xf32>
    %c0_6 = arith.constant 0 : index
    %c0_7 = arith.constant 0 : index
    %12 = vector.load %arg5[%c0_6, %c0_7] : memref<1x32xf32, #tpu.memory_space<vmem>>, vector<1x32xf32>
    %13 = vector.broadcast %12 : vector<1x32xf32> to vector<180x32xf32>
    %14 = arith.addf %11, %13 : vector<180x32xf32>
    %cst_8 = arith.constant 0.000000e+00 : f32
    %15 = vector.broadcast %cst_8 : f32 to vector<180x32xf32>
    %16 = arith.maximumf %14, %15 : vector<180x32xf32>
    %17 = vector.shape_cast %16 : vector<180x32xf32> to vector<10x18x32xf32>
    %18 = tpu.iota {dimensions = array<i32: 0>} : vector<10x18x1xi32>
    %19 = vector.broadcast %1 : i32 to vector<10x18x1xi32>
    %20 = arith.addi %19, %18 : vector<10x18x1xi32>
    %21 = tpu.iota {dimensions = array<i32: 1>} : vector<10x18x1xi32>
    %c0_i32 = arith.constant 0 : i32
    %22 = vector.broadcast %c0_i32 : i32 to vector<10x18x1xi32>
    %23 = arith.cmpi sgt, %20, %22 : vector<10x18x1xi32>
    %c17_i32 = arith.constant 17 : i32
    %24 = vector.broadcast %c17_i32 : i32 to vector<10x18x1xi32>
    %25 = arith.cmpi slt, %20, %24 : vector<10x18x1xi32>
    %26 = arith.andi %23, %25 : vector<10x18x1xi1>
    %c0_i32_9 = arith.constant 0 : i32
    %27 = vector.broadcast %c0_i32_9 : i32 to vector<10x18x1xi32>
    %28 = arith.cmpi sgt, %21, %27 : vector<10x18x1xi32>
    %29 = arith.andi %26, %28 : vector<10x18x1xi1>
    %c17_i32_10 = arith.constant 17 : i32
    %30 = vector.broadcast %c17_i32_10 : i32 to vector<10x18x1xi32>
    %31 = arith.cmpi slt, %21, %30 : vector<10x18x1xi32>
    %32 = arith.andi %29, %31 : vector<10x18x1xi1>
    %33 = arith.extui %32 : vector<10x18x1xi1> to vector<10x18x1xi32>
    %34 = arith.sitofp %33 : vector<10x18x1xi32> to vector<10x18x1xf32>
    %35 = vector.broadcast %34 : vector<10x18x1xf32> to vector<10x18x32xf32>
    %36 = arith.mulf %17, %35 : vector<10x18x32xf32>
    %37 = arith.truncf %36 : vector<10x18x32xf32> to vector<10x18x32xbf16>
    %38 = vector.extract_strided_slice %37 {offsets = [0, 0, 0], sizes = [8, 16, 32], strides = [1, 1, 1]} : vector<10x18x32xbf16> to vector<8x16x32xbf16>
    %39 = vector.extract_strided_slice %37 {offsets = [0, 1, 0], sizes = [8, 16, 32], strides = [1, 1, 1]} : vector<10x18x32xbf16> to vector<8x16x32xbf16>
    %40 = vector.extract_strided_slice %37 {offsets = [0, 2, 0], sizes = [8, 16, 32], strides = [1, 1, 1]} : vector<10x18x32xbf16> to vector<8x16x32xbf16>
    %41 = vector.extract_strided_slice %37 {offsets = [1, 0, 0], sizes = [8, 16, 32], strides = [1, 1, 1]} : vector<10x18x32xbf16> to vector<8x16x32xbf16>
    %42 = vector.extract_strided_slice %37 {offsets = [1, 1, 0], sizes = [8, 16, 32], strides = [1, 1, 1]} : vector<10x18x32xbf16> to vector<8x16x32xbf16>
    %43 = vector.extract_strided_slice %37 {offsets = [1, 2, 0], sizes = [8, 16, 32], strides = [1, 1, 1]} : vector<10x18x32xbf16> to vector<8x16x32xbf16>
    %44 = vector.extract_strided_slice %37 {offsets = [2, 0, 0], sizes = [8, 16, 32], strides = [1, 1, 1]} : vector<10x18x32xbf16> to vector<8x16x32xbf16>
    %45 = vector.extract_strided_slice %37 {offsets = [2, 1, 0], sizes = [8, 16, 32], strides = [1, 1, 1]} : vector<10x18x32xbf16> to vector<8x16x32xbf16>
    %46 = vector.extract_strided_slice %37 {offsets = [2, 2, 0], sizes = [8, 16, 32], strides = [1, 1, 1]} : vector<10x18x32xbf16> to vector<8x16x32xbf16>
    %47 = tpu.concatenate %38, %39, %40, %41, %42, %43, %44, %45, %46 in 2 : vector<8x16x32xbf16>, vector<8x16x32xbf16>, vector<8x16x32xbf16>, vector<8x16x32xbf16>, vector<8x16x32xbf16>, vector<8x16x32xbf16>, vector<8x16x32xbf16>, vector<8x16x32xbf16>, vector<8x16x32xbf16> -> vector<8x16x288xbf16>
    %48 = vector.shape_cast %47 : vector<8x16x288xbf16> to vector<128x288xbf16>
    %c0_11 = arith.constant 0 : index
    %c0_12 = arith.constant 0 : index
    %49 = vector.load %arg6[%c0_11, %c0_12] : memref<288x32xbf16, #tpu.memory_space<vmem>>, vector<288x32xbf16>
    %cst_13 = arith.constant dense<0.000000e+00> : vector<128x32xf32>
    %50 = tpu.matmul %48, %49, %cst_13 {dimension_numbers = #tpu.dot_dimension_numbers<[1], [0], [0], [1], [0, 0, 1, 1], [], []>} : vector<128x288xbf16>, vector<288x32xbf16>, vector<128x32xf32> -> vector<128x32xf32>
    %c0_14 = arith.constant 0 : index
    %c0_15 = arith.constant 0 : index
    %51 = vector.load %arg7[%c0_14, %c0_15] : memref<1x32xf32, #tpu.memory_space<vmem>>, vector<1x32xf32>
    %52 = vector.broadcast %51 : vector<1x32xf32> to vector<128x32xf32>
    %53 = arith.mulf %50, %52 : vector<128x32xf32>
    %c0_16 = arith.constant 0 : index
    %c0_17 = arith.constant 0 : index
    %54 = vector.load %arg8[%c0_16, %c0_17] : memref<1x32xf32, #tpu.memory_space<vmem>>, vector<1x32xf32>
    %55 = vector.broadcast %54 : vector<1x32xf32> to vector<128x32xf32>
    %56 = arith.addf %53, %55 : vector<128x32xf32>
    %cst_18 = arith.constant 0.000000e+00 : f32
    %57 = vector.broadcast %cst_18 : f32 to vector<128x32xf32>
    %58 = arith.maximumf %56, %57 : vector<128x32xf32>
    %59 = arith.truncf %58 : vector<128x32xf32> to vector<128x32xbf16>
    %c0_19 = arith.constant 0 : index
    %c0_20 = arith.constant 0 : index
    %60 = vector.load %arg9[%c0_19, %c0_20] : memref<32x128xbf16, #tpu.memory_space<vmem>>, vector<32x128xbf16>
    %cst_21 = arith.constant dense<0.000000e+00> : vector<128x128xf32>
    %61 = tpu.matmul %59, %60, %cst_21 {dimension_numbers = #tpu.dot_dimension_numbers<[1], [0], [0], [1], [0, 0, 1, 1], [], []>} : vector<128x32xbf16>, vector<32x128xbf16>, vector<128x128xf32> -> vector<128x128xf32>
    %c0_22 = arith.constant 0 : index
    %c0_23 = arith.constant 0 : index
    %62 = vector.load %arg10[%c0_22, %c0_23] : memref<1x128xf32, #tpu.memory_space<vmem>>, vector<1x128xf32>
    %63 = vector.broadcast %62 : vector<1x128xf32> to vector<128x128xf32>
    %64 = arith.mulf %61, %63 : vector<128x128xf32>
    %c0_24 = arith.constant 0 : index
    %c0_25 = arith.constant 0 : index
    %65 = vector.load %arg11[%c0_24, %c0_25] : memref<1x128xf32, #tpu.memory_space<vmem>>, vector<1x128xf32>
    %66 = vector.broadcast %65 : vector<1x128xf32> to vector<128x128xf32>
    %67 = arith.addf %64, %66 : vector<128x128xf32>
    %c1_i32 = arith.constant 1 : i32
    %68 = arith.addi %1, %c1_i32 : i32
    %c0_26 = arith.constant 0 : index
    %69 = arith.index_cast %68 : i32 to index
    %c1 = arith.constant 1 : index
    %c0_27 = arith.constant 0 : index
    %70 = vector.load %arg2[%c0_26, %69, %c1, %c0_27] : memref<1x18x18x128xf32, #tpu.memory_space<vmem>>, vector<1x8x16x128xf32>
    %71 = vector.shape_cast %70 : vector<1x8x16x128xf32> to vector<8x16x128xf32>
    %72 = vector.shape_cast %67 : vector<128x128xf32> to vector<8x16x128xf32>
    %73 = arith.addf %72, %71 : vector<8x16x128xf32>
    %cst_28 = arith.constant 0.000000e+00 : f32
    %74 = vector.broadcast %cst_28 : f32 to vector<8x16x128xf32>
    %75 = arith.maximumf %73, %74 : vector<8x16x128xf32>
    %c0_29 = arith.constant 0 : index
    %c0_30 = arith.constant 0 : index
    %c0_31 = arith.constant 0 : index
    %c0_32 = arith.constant 0 : index
    %76 = vector.load %arg12[%c0_29, %c0_30, %c0_31, %c0_32] : memref<1x8x16x128xf32, #tpu.memory_space<vmem>>, vector<1x8x16x128xf32>
    %77 = vector.shape_cast %76 : vector<1x8x16x128xf32> to vector<8x16x128xf32>
    %78 = vector.shape_cast %75 : vector<8x16x128xf32> to vector<1x8x16x128xf32>
    tpu.vector_store %arg12[%c0_29, %c0_30, %c0_31, %c0_32], %78 {strides = array<i32>} : memref<1x8x16x128xf32, #tpu.memory_space<vmem>>, vector<1x8x16x128xf32>,
    return
  }
  func.func @transform_0(%arg0: i32, %arg1: i32) -> (i32, i32, i32, i32) {
    %c0_i32 = arith.constant 0 : i32
    %c0_i32_0 = arith.constant 0 : i32
    %c0_i32_1 = arith.constant 0 : i32
    %c0_i32_2 = arith.constant 0 : i32
    return %arg0, %c0_i32, %c0_i32_0, %c0_i32_1 : i32, i32, i32, i32
  }
  func.func @transform_1(%arg0: i32, %arg1: i32) -> (i32, i32) {
    %c0_i32 = arith.constant 0 : i32
    %c0_i32_0 = arith.constant 0 : i32
    %c0_i32_1 = arith.constant 0 : i32
    return %c0_i32, %c0_i32_0 : i32, i32
  }
  func.func @transform_2(%arg0: i32, %arg1: i32) -> (i32, i32) {
    %c0_i32 = arith.constant 0 : i32
    %c0_i32_0 = arith.constant 0 : i32
    %c0_i32_1 = arith.constant 0 : i32
    return %c0_i32, %c0_i32_0 : i32, i32
  }
  func.func @transform_3(%arg0: i32, %arg1: i32) -> (i32, i32) {
    %c0_i32 = arith.constant 0 : i32
    %c0_i32_0 = arith.constant 0 : i32
    %c0_i32_1 = arith.constant 0 : i32
    return %c0_i32, %c0_i32_0 : i32, i32
  }
  func.func @transform_4(%arg0: i32, %arg1: i32) -> (i32, i32) {
    %c0_i32 = arith.constant 0 : i32
    %c0_i32_0 = arith.constant 0 : i32
    %c0_i32_1 = arith.constant 0 : i32
    return %c0_i32, %c0_i32_0 : i32, i32
  }
  func.func @transform_5(%arg0: i32, %arg1: i32) -> (i32, i32) {
    %c0_i32 = arith.constant 0 : i32
    %c0_i32_0 = arith.constant 0 : i32
    %c0_i32_1 = arith.constant 0 : i32
    return %c0_i32, %c0_i32_0 : i32, i32
  }
  func.func @transform_6(%arg0: i32, %arg1: i32) -> (i32, i32) {
    %c0_i32 = arith.constant 0 : i32
    %c0_i32_0 = arith.constant 0 : i32
    %c0_i32_1 = arith.constant 0 : i32
    return %c0_i32, %c0_i32_0 : i32, i32
  }
  func.func @transform_7(%arg0: i32, %arg1: i32) -> (i32, i32) {
    %c0_i32 = arith.constant 0 : i32
    %c0_i32_0 = arith.constant 0 : i32
    %c0_i32_1 = arith.constant 0 : i32
    return %c0_i32, %c0_i32_0 : i32, i32
  }
  func.func @transform_8(%arg0: i32, %arg1: i32) -> (i32, i32) {
    %c0_i32 = arith.constant 0 : i32
    %c0_i32_0 = arith.constant 0 : i32
    %c0_i32_1 = arith.constant 0 : i32
    return %c0_i32, %c0_i32_0 : i32, i32
  }
  func.func @transform_9(%arg0: i32, %arg1: i32) -> (i32, i32) {
    %c0_i32 = arith.constant 0 : i32
    %c0_i32_0 = arith.constant 0 : i32
    %c0_i32_1 = arith.constant 0 : i32
    return %c0_i32, %c0_i32_0 : i32, i32
  }
  func.func @transform_10(%arg0: i32, %arg1: i32) -> (i32, i32, i32, i32) {
    %c0_i32 = arith.constant 0 : i32
    %c0_i32_0 = arith.constant 0 : i32
    %c0_i32_1 = arith.constant 0 : i32
    return %arg0, %arg1, %c0_i32, %c0_i32_0 : i32, i32, i32, i32
  }
}

</mosaic_0001>

<bundles_post_ra>
// kernel: tpu_custom_call.1
= control target key start
LH: loop header
LB: loop body
LE: loop exit
PB: predicated region body
PF: predicated region fallthrough
CT: control target
= control target key end

     0   :  { %15 = vsyncpa [#allocation3], 0  ;;  %s7317_s0 = inlined_call_operand.vmem [shape: f32[2,18,18,128], index: 0, kind: input, shape index: {}]   ;;  %s7318_s1 = inlined_call_operand.vmem [shape: bf16[128,32], index: 1, kind: input, shape index: {}]   ;;  %s7319_s2 = inlined_call_operand.vmem [shape: f32[1,32], index: 2, kind: input, shape index: {}]   ;;  %s7320_s3 = inlined_call_operand.vmem [shape: f32[1,32], index: 3, kind: input, shape index: {}]   ;;  %s7321_s4 = inlined_call_operand.vmem [shape: bf16[288,32], index: 4, kind: input, shape index: {}]   ;;  %s7322_s5 = inlined_call_operand.vmem [shape: f32[1,32], index: 5, kind: input, shape index: {}]   ;;  %s7323_s6 = inlined_call_operand.vmem [shape: f32[1,32], index: 6, kind: input, shape index: {}]   ;;  %s7324_s7 = inlined_call_operand.vmem [shape: bf16[32,128], index: 7, kind: input, shape index: {}]   ;;  %s7325_s8 = inlined_call_operand.vmem [shape: f32[1,128], index: 8, kind: input, shape index: {}]   ;;  %s7326_s9 = inlined_call_operand.vmem [shape: f32[1,128], index: 9, kind: input, shape index: {}]   ;;  %s7327_s10 = inlined_call_operand.hbm [shape: f32[2,16,16,128], index: 10, kind: output, shape index: {}]  }
   0x1   :  { %17 = vsyncpa [#allocation3 + $0x1], 0  ;;  %s5385_s13 = smov 0   ;;  %s5387_s14 = smov 0  }
   0x2   :  { %s5389_s15 = smov 0   ;;  %s5391_s16 = smov 0  }
   0x3   :  { %s5393_s17 = smov 0   ;;  %s5395_s18 = smov 0  }
   0x4   :  { %s5397_s19 = smov 0   ;;  %s5399_s20 = smov 0  }
   0x5 LB: > { %7348 = sst [smem:[#allocation5_spill]] %s5308_s18  ;;  %s4766_s21 = sadd.s32 4294967295, %s5316_s20   ;;  %s5316_s20 = sphi %s5399_s20, %s23_s20   ;;  %s5312_s19 = sphi %s5397_s19, %s7509_s19   ;;  %s5308_s18 = sphi %s5395_s18, %s7508_s18   ;;  %s5304_s17 = sphi %s5393_s17, %s7507_s17   ;;  %s5300_s16 = sphi %s5391_s16, %s7506_s16   ;;  %s5296_s15 = sphi %s5389_s15, %s7512_s15   ;;  %s5292_s14 = sphi %s5387_s14, %s7511_s14   ;;  %s5288_s13 = sphi %s5385_s13, %s7510_s13  }
   0x6   : > { %7349 = sst [smem:[#allocation6_spill]] %s5312_s19  ;;  %s4767_s22 = sadd.s32 4294967294, %s5316_s20  }
   0x7   : > { %s32_s23 = sadd.s32 1, %s5308_s18  ;;  %s35_s24 = sadd.s32 1, %s5312_s19 }
   0x8   : > { %p33_p0 = scmp.ge.s32.totalorder %s32_s23, 2  ;;  %p269_p1 = scmp.ne.s32.totalorder %s5296_s15, %s5292_s14 }
   0x9   : > { %p270_p2 = scmp.eq.s32.totalorder %s4766_s21, 3  ;;  %p275_p5 = scmp.ne.s32.totalorder %s5292_s14, %s5288_s13 }
   0xa   : > { %s7514_s23 = smov (%p33_p0, %s32_s23), 0  ;;  %s7516_s24 = smov (!%p33_p0, %s35_s24), %s5312_s19 }
   0xb   : > { %7350 = sst [smem:[#allocation7_spill]] %s7514_s23  ;;  %s255_s25 = ssub.s32 %s5308_s18, %s7514_s23 }
   0xc   : > { %p5436_p3 = por %p270_p2, %p269_p1  ;;  %p37_p4 = scmp.ge.s32.totalorder %s7516_s24, 2 }
   0xd   : > { %p276_p6 = scmp.eq.s32.totalorder %s4767_s22, 3  ;;  %p4770_p7 = scmp.ge.s32.totalorder %s5316_s20, 1 }
   0xe   : > { %s7518_s24 = smov (%p37_p4, %s7516_s24), 0  ;;  %p329_p9 = scmp.lt.s32.totalorder %s5316_s20, 5 }
   0xf   : > { %7352 = sst [smem:[#allocation8_spill]] %s7518_s24  ;;  %p5445_p8 = por %p276_p6, %p275_p5 }
  0x10   : > { %s254_s28 = ssub.s32 %s5312_s19, %s7518_s24  ;;  %s259_s29 = sadd.s32 1, %s5296_s15 }
  0x11   : > { %s256_s30 = sor.u32 %s255_s25, %s254_s28  ;;  %p330_p10 = pnand %p4770_p7, %p329_p9 }
  0x12   : > { %p257_p11 = scmp.eq.s32.totalorder %s256_s30, 0 }
  0x13   : > { %333 = sbr.rel (%p330_p10) target bundleno = 983 (0x3d7), region = 60 }
  0x14   : > { %s5454_s11 = scalar_select %p257_p11, %s5296_s15, %s259_s29  }
  0x18   : > { %v5174_v0 = vld [vmem:[%s7318_s1 + $0x38] sm:$0xff]   ;;  %p367_p12 = scmp.lt.s32.totalorder %s5304_s17, 1  ;;  %v5175_v1 = vld [vmem:[%s7318_s1 + $0x30] sm:$0xff]   ;;  %s4774_s25 = smul.u32 192, %s5300_s16  ;;  %v5176_v2 = vld [vmem:[%s7318_s1 + $0x28] sm:$0xff]   ;;  %v441_v3 = vlaneseq }
  0x19   : > { %4995 = vmatprep.subr.bf16.mxu0 %v5174_v0  ;;  %v5177_v4 = vld [vmem:[%s7318_s1 + $0x20] sm:$0xff]   ;;  %v5318_v7 = vmov 1983009808   ;;  %v5178_v15 = vld [vmem:[%s7318_s1 + $0x18] sm:$0xff]   ;;  %v5179_v42 = vld [vmem:[%s7318_s1 + $0x10] sm:$0xff]   ;;  %s4773_s23 = sshll.u32 %s5300_s16, 3 }
  0x1a   : > { %s368_s24 = scalar_select %p367_p12, %s5304_s17, 1  ;;  %4996 = vmatpush3.bf16.msra.mxu0 %v5174_v0  ;;  %v439_v8 = vunpack.c.l.s4 %v5318_v7  ;;  %v5478_v9 = vshrl.u32 %v441_v3, 7  ;;  %v5180_v51 = vld [vmem:[%s7318_s1 + $0x8] sm:$0xff]  }
  0x1b   : > { %4997 = vmatprep.subr.bf16.mxu0 %v5175_v1  ;;  %s4886_s22 = sshll.u32 %s5304_s17, 5 }
  0x1c   : > { %s5091_s30 = smul.u32 432, %s368_s24  ;;  %v440_v17 = vunpack.c.0.s8 %v439_v8  ;;  %vm2078_vm7 = vcmp.gt.s32.totalorder %v5478_v9, 0  ;;  %s5324_s24 = smov 96  }
  0x1e   : > { %s371_s19 = scalar_lea.vmem %s7317_s0, %s5091_s30  ;;  %4998 = vmatpush3.bf16.msra.mxu0 %v5175_v1  ;;  %v5511_v27 = vsub.s32 %v440_v17, %v5478_v9 }
  0x1f   : > { %s5471_s18 = scalar_lea.vmem %s371_s19, %s4774_s25  ;;  %4999 = vmatprep.subr.bf16.mxu0 %v5176_v2  ;;  %s5325_s19 = smov 32  }
  0x20   : > { %v377_v5 = vld [vmem:[%s5471_s18] sm:$0xff]  ;;  %v378_v6 = vld [vmem:[%s5471_s18 + $0x8] sm:$0xff]  ;;  %v380_v10 = vld [vmem:[%s5471_s18 + $0x18] sm:$0xff]  ;;  %s5326_s25 = smov 64  }
  0x21   : > { %v381_v11 = vld [vmem:[%s5471_s18 + $0x20] sm:$0xff]  ;;  %v5483_v12 = vld [vmem:[%s5471_s18 + $0x30] sm:$0xff]  ;;  %v5486_v13 = vld [vmem:[%s5471_s18 + $0x38] sm:$0xff]  ;;  %v437_v16 = vcombine.high %v377_v5, %v377_v5  ;;  %v454_v18 = vcombine.high %v378_v6, %v378_v6  ;;  %v478_v20 = vcombine.high %v380_v10, %v380_v10  ;;  %v444_v37 = vrot.slane %v377_v5, %v5511_v27 }
  0x22   : > { %v5489_v14 = vld [vmem:[%s5471_s18 + $0x48] sm:$0xff]  ;;  %5000 = vmatpush3.bf16.msra.mxu0 %v5176_v2  ;;  %v5495_v19 = vld [vmem:[%s5471_s18 + $0x60] sm:$0xff]  ;;  %v495_v21 = vcombine.high %v381_v11, %v381_v11  ;;  %v519_v22 = vcombine.high %v5483_v12, %v5483_v12  ;;  %v5500_v23 = vld [vmem:[%s5471_s18 + $0x50] sm:$0xff]  ;;  %v536_v24 = vcombine.high %v5486_v13, %v5486_v13  ;;  %v461_v39 = vrot.slane %v378_v6, %v5511_v27 }
  0x23   : > { %5001 = vmatprep.subr.bf16.mxu0 %v5177_v4  ;;  %v5505_v25 = vld [vmem:[%s5471_s18 + $0x68] sm:$0xff]  ;;  %v5508_v26 = vld [vmem:[%s5471_s18 + $0x78] sm:$0xff]  ;;  %v560_v28 = vcombine.high %v5489_v14, %v5489_v14  ;;  %v577_v29 = vcombine.high %v5500_v23, %v5500_v23  ;;  %v601_v30 = vcombine.high %v5495_v19, %v5495_v19  ;;  %v5520_v31 = vld [vmem:[%s5471_s18 + $0x80] sm:$0xff]  ;;  %v451_v38 = vrot.slane %v437_v16, %v5511_v27 }
  0x24   : > { %v5523_v32 = vld [vmem:[%s5471_s18 + $0x90] sm:$0xff]  ;;  %v618_v33 = vcombine.high %v5505_v25, %v5505_v25  ;;  %v642_v34 = vcombine.high %v5508_v26, %v5508_v26  ;;  %v659_v35 = vcombine.high %v5520_v31, %v5520_v31  ;;  %v468_v40 = vrot.slane %v454_v18, %v5511_v27  ;;  %v4776_v60 = vld.sshfl [vmem:[%s5471_s18 + $0x28] sm:$0x3 pattern:$0x76325410]  ;;  %v5181_v5 = vld [vmem:[%s7318_s1] sm:$0xff]  }
  0x25   : > { %v683_v36 = vcombine.high %v5523_v32, %v5523_v32  ;;  %v4775_v41 = vld.sshfl [vmem:[%s5471_s18 + $0x10] sm:$0x3 pattern:$0x76325410]  ;;  %v485_v43 = vrot.slane %v380_v10, %v5511_v27  ;;  %v492_v44 = vrot.slane %v478_v20, %v5511_v27  ;;  %v502_v45 = vrot.slane %v381_v11, %v5511_v27 }
  0x26   : > { %5002 = vmatpush3.bf16.msra.mxu0 %v5177_v4  ;;  %v509_v46 = vrot.slane %v495_v21, %v5511_v27  ;;  %v452_v47 = vcombine.high %v444_v37, %v444_v37  ;;  %v453_v48 = vcombine.high %v451_v38, %v451_v38  ;;  %v469_v49 = vcombine.high %v461_v39, %v461_v39 }
  0x27   : > { %5003 = vmatprep.subr.bf16.mxu0 %v5178_v15  ;;  %v470_v50 = vcombine.high %v468_v40, %v468_v40  ;;  %v493_v52 = vcombine.high %v485_v43, %v485_v43  ;;  %v494_v53 = vcombine.high %v492_v44, %v492_v44  ;;  %v510_v54 = vcombine.high %v502_v45, %v502_v45 }
  0x28   : > { %v881_v55 = vcombine.low %v4775_v41, %v485_v43  ;;  %v847_v56 = vcombine.low %v444_v37, %v452_v47  ;;  %v848_v57 = vcombine.low %v451_v38, %v453_v48  ;;  %v864_v58 = vcombine.low %v461_v39, %v469_v49  ;;  %v4777_v38 = vld.sshfl [vmem:[%s5471_s18 + $0x40] sm:$0x3 pattern:$0x76325410] }
  0x29   : > { %v865_v59 = vcombine.low %v468_v40, %v470_v50  ;;  %v882_v61 = vcombine.low %v493_v52, %v492_v44  ;;  %v898_v63 = vcombine.low %v494_v53, %v502_v45  ;;  %v899_v0 = vcombine.low %v510_v54, %v509_v46  ;;  %v4778_v54 = vld.sshfl [vmem:[%s5471_s18 + $0x58] sm:$0x3 pattern:$0x76325410] }
  0x2a   : > { %5004 = vmatpush3.bf16.msra.mxu0 %v5178_v15  ;;  %v889_v62 = vrot.slane %v881_v55, %v5511_v27  ;;  %v855_v1 = vrot.slane %v847_v56, %v5511_v27  ;;  %v862_v2 = vrot.slane %v848_v57, %v5511_v27  ;;  %v872_v3 = vrot.slane %v864_v58, %v5511_v27 }
  0x2b   : > { %5005 = vmatprep.subr.bf16.mxu0 %v5179_v42  ;;  %v879_v4 = vrot.slane %v865_v59, %v5511_v27  ;;  %v896_v6 = vrot.slane %v882_v61, %v5511_v27  ;;  %v906_v7 = vrot.slane %v898_v63, %v5511_v27  ;;  %v913_v8 = vrot.slane %v899_v0, %v5511_v27 }
  0x2c   : > { %v511_v10 = vcombine.high %v509_v46, %v509_v46  ;;  %v863_v11 = vcombine.low %v855_v1, %v862_v2  ;;  %v526_v16 = vrot.slane %v5483_v12, %v5511_v27  ;;  %v533_v17 = vrot.slane %v519_v22, %v5511_v27 }
  0x2d   : > { %v880_v15 = vcombine.low %v872_v3, %v879_v4  ;;  %v897_v18 = vcombine.low %v889_v62, %v896_v6  ;;  %v914_v20 = vcombine.low %v906_v7, %v913_v8  ;;  %v543_v21 = vrot.slane %v5486_v13, %v5511_v27 }
  0x2e   : > { %5006 = vmatpush3.bf16.msra.mxu0 %v5179_v42  ;;  %v915_v37 = vcombine.low %v511_v10, %v4776_v60  ;;  %v534_v40 = vcombine.high %v526_v16, %v526_v16  ;;  %v535_v41 = vcombine.high %v533_v17, %v533_v17  ;;  %v550_v42 = vrot.slane %v536_v24, %v5511_v27 }
  0x2f   : > { %5007 = vmatprep.subr.bf16.mxu0 %v5180_v51  ;;  %v1252_v39 = vpack.c.bf16 %v880_v15, %v863_v11  ;;  %v1253_v43 = vpack.c.bf16 %v914_v20, %v897_v18  ;;  %v551_v12 = vcombine.high %v543_v21, %v543_v21  ;;  %v567_v44 = vrot.slane %v5489_v14, %v5511_v27  ;;  %v4779_v15 = vld.sshfl [vmem:[%s5471_s18 + $0x70] sm:$0x3 pattern:$0x76325410] }
  0x30   : > { %v923_v22 = vrot.slane %v915_v37, %v5511_v27  ;;  %v916_v45 = vcombine.low %v526_v16, %v534_v40  ;;  %v932_v46 = vcombine.low %v533_v17, %v535_v41  ;;  %v552_v47 = vcombine.high %v550_v42, %v550_v42 }
  0x31   : > { %5011 = vmatprep.mubr.bf16.mxu0 %v1252_v39  ;;  %v933_v48 = vcombine.low %v543_v21, %v551_v12  ;;  %v574_v13 = vrot.slane %v560_v28, %v5511_v27  ;;  %v575_v24 = vcombine.high %v567_v44, %v567_v44  ;;  %v584_v49 = vrot.slane %v5500_v23, %v5511_v27 }
  0x32   : > { %5008 = vmatpush3.bf16.msra.mxu0 %v5180_v51  ;;  %v930_v50 = vrot.slane %v916_v45, %v5511_v27  ;;  %v940_v52 = vrot.slane %v932_v46, %v5511_v27  ;;  %v949_v51 = vcombine.low %v550_v42, %v552_v47  ;;  %v950_v53 = vcombine.low %v4777_v38, %v567_v44 }
  0x33   : > { %5009 = vmatprep.subr.bf16.mxu0 %v5181_v5  ;;  %v947_v55 = vrot.slane %v933_v48, %v5511_v27  ;;  %v576_v56 = vcombine.high %v574_v13, %v574_v13  ;;  %v966_v57 = vcombine.low %v575_v24, %v574_v13  ;;  %v591_v14 = vrot.slane %v577_v29, %v5511_v27  ;;  %v4780_v13 = vld.sshfl [vmem:[%s5471_s18 + $0x88] sm:$0x3 pattern:$0x76325410] }
  0x34   : > { %v931_v28 = vcombine.low %v923_v22, %v930_v50  ;;  %v957_v58 = vrot.slane %v949_v51, %v5511_v27  ;;  %v964_v59 = vrot.slane %v950_v53, %v5511_v27  ;;  %v592_v60 = vcombine.high %v584_v49, %v584_v49 }
  0x35   : > { %v948_v61 = vcombine.low %v940_v52, %v947_v55  ;;  %v967_v62 = vcombine.low %v576_v56, %v584_v49  ;;  %v974_v63 = vrot.slane %v966_v57, %v5511_v27  ;;  %v593_v0 = vcombine.high %v591_v14, %v591_v14  ;;  %v396_v52 = vld [vmem:[%s5471_s18 + $0x98] sm:$0xff]  ;;  %v398_v55 = vld [vmem:[%s5471_s18 + $0xa8] sm:$0xff] }
  0x36   : > { %5010 = vmatpush3.bf16.msra.mxu0 %v5181_v5  ;;  %v965_v1 = vcombine.low %v957_v58, %v964_v59  ;;  %v608_v2 = vrot.slane %v5495_v19, %v5511_v27  ;;  %v615_v23 = vrot.slane %v601_v30, %v5511_v27  ;;  %v983_v29 = vcombine.low %v592_v60, %v591_v14  ;;  %v4781_v58 = vld.sshfl [vmem:[%s5471_s18 + $0xa0] sm:$0x3 pattern:$0x76325410] }
  0x37   : > { %v1254_v3 = vpack.c.bf16 %v948_v61, %v931_v28  ;;  %v981_v4 = vrot.slane %v967_v62, %v5511_v27  ;;  %v984_v5 = vcombine.low %v593_v0, %v4778_v54  ;;  %v625_v6 = vrot.slane %v5505_v25, %v5511_v27 }
  0x38   : > { %v616_v7 = vcombine.high %v608_v2, %v608_v2  ;;  %v617_v8 = vcombine.high %v615_v23, %v615_v23  ;;  %v991_v10 = vrot.slane %v983_v29, %v5511_v27  ;;  %v632_v11 = vrot.slane %v618_v33, %v5511_v27  ;;  %v399_v29 = vld [vmem:[%s5471_s18 + $0xb0] sm:$0xff] }
  0x39   : > { %5012 = vmatmul.mubr.bf16.vlgmr.msra.gmra.mxu0 %v1253_v43  ;;  %v982_v19 = vcombine.low %v974_v63, %v981_v4  ;;  %v998_v30 = vrot.slane %v984_v5, %v5511_v27  ;;  %v633_v16 = vcombine.high %v625_v6, %v625_v6  ;;  %v649_v17 = vrot.slane %v5508_v26, %v5511_v27 }
  0x3a   : > { %5015 = vmatprep.mubr.bf16.mxu0 %v1254_v3  ;;  %v1000_v18 = vcombine.low %v608_v2, %v616_v7  ;;  %v1001_v20 = vcombine.low %v615_v23, %v617_v8  ;;  %v634_v21 = vcombine.high %v632_v11, %v632_v11  ;;  %v656_v37 = vrot.slane %v642_v34, %v5511_v27  ;;  %v401_v7 = vld [vmem:[%s5471_s18 + $0xc0] sm:$0xff] }
  0x3b   : > { %v1255_v38 = vpack.c.bf16 %v982_v19, %v965_v1  ;;  %v999_v25 = vcombine.low %v991_v10, %v998_v30  ;;  %v657_v33 = vcombine.high %v649_v17, %v649_v17  ;;  %v1017_v39 = vcombine.low %v625_v6, %v633_v16 }
  0x3c   : > { %v1008_v40 = vrot.slane %v1000_v18, %v5511_v27  ;;  %v1015_v41 = vrot.slane %v1001_v20, %v5511_v27  ;;  %v1018_v42 = vcombine.low %v632_v11, %v634_v21  ;;  %v1034_v43 = vcombine.low %v4779_v15, %v649_v17 }
  0x3d   : > { %v1025_v12 = vrot.slane %v1017_v39, %v5511_v27  ;;  %v1035_v22 = vcombine.low %v657_v33, %v656_v37  ;;  %v658_v44 = vcombine.high %v656_v37, %v656_v37  ;;  %v666_v26 = vrot.slane %v5520_v31, %v5511_v27 }
  0x3e   : > { %v1016_v34 = vcombine.low %v1008_v40, %v1015_v41  ;;  %v1032_v45 = vrot.slane %v1018_v42, %v5511_v27  ;;  %v1042_v46 = vrot.slane %v1034_v43, %v5511_v27  ;;  %v673_v47 = vrot.slane %v659_v35, %v5511_v27  ;;  %v402_v40 = vld [vmem:[%s5471_s18 + $0xc8] sm:$0xff]  ;;  %v4782_v43 = vld.sshfl [vmem:[%s5471_s18 + $0xb8] sm:$0x3 pattern:$0x76325410] }
  0x3f   : > { %v1049_v48 = vrot.slane %v1035_v22, %v5511_v27  ;;  %v674_v24 = vcombine.high %v666_v26, %v666_v26  ;;  %v690_v49 = vrot.slane %v5523_v32, %v5511_v27  ;;  %v1051_v50 = vcombine.low %v658_v44, %v666_v26 }
  0x40   : > { %v1256_v51 = vpack.c.bf16 %v1016_v34, %v999_v25  ;;  %v1033_v53 = vcombine.low %v1025_v12, %v1032_v45  ;;  %v675_v54 = vcombine.high %v673_v47, %v673_v47  ;;  %v697_v31 = vrot.slane %v683_v36, %v5511_v27 }
  0x41   : > { %5016 = vmatmul.mubr.bf16.gmra.mxu0 %v1255_v38  ;;  %v1050_v35 = vcombine.low %v1042_v46, %v1049_v48  ;;  %v698_v56 = vcombine.high %v690_v49, %v690_v49  ;;  %v1052_v57 = vcombine.low %v674_v24, %v673_v47  ;;  %v1059_v14 = vrot.slane %v1051_v50, %v5511_v27 }
  0x42   : > { %5019 = vmatprep.mubr.bf16.mxu0 %v1256_v51  ;;  %v1068_v28 = vcombine.low %v675_v54, %v4780_v13  ;;  %v699_v59 = vcombine.high %v697_v31, %v697_v31  ;;  %v700_v60 = vcombine.high %v396_v52, %v396_v52  ;;  %v707_v61 = vrot.slane %v396_v52, %v5511_v27  ;;  %v404_v51 = vld [vmem:[%s5471_s18 + $0xd8] sm:$0xff] }
  0x43   : > { %v1257_v62 = vpack.c.bf16 %v1050_v35, %v1033_v53  ;;  %v1066_v63 = vrot.slane %v1052_v57, %v5511_v27  ;;  %v1069_v0 = vcombine.low %v690_v49, %v698_v56  ;;  %v731_v32 = vrot.slane %v398_v55, %v5511_v27  ;;  %v405_v35 = vld [vmem:[%s5471_s18 + $0xe0] sm:$0xff] }
  0x44   : > { %v1076_v36 = vrot.slane %v1068_v28, %v5511_v27  ;;  %v714_v1 = vrot.slane %v700_v60, %v5511_v27  ;;  %v715_v2 = vcombine.high %v707_v61, %v707_v61  ;;  %v1085_v23 = vcombine.low %v697_v31, %v699_v59 }
  0x45   : > { %v1067_v3 = vcombine.low %v1059_v14, %v1066_v63  ;;  %v1083_v4 = vrot.slane %v1069_v0, %v5511_v27  ;;  %v1103_v5 = vcombine.low %v4781_v58, %v731_v32  ;;  %v724_v6 = vcombine.high %v398_v55, %v398_v55 }
  0x46   : > { %v716_v8 = vcombine.high %v714_v1, %v714_v1  ;;  %v1086_v10 = vcombine.low %v707_v61, %v715_v2  ;;  %v1093_v11 = vrot.slane %v1085_v23, %v5511_v27  ;;  %v739_v19 = vcombine.high %v731_v32, %v731_v32  ;;  %v4783_v32 = vld.sshfl [vmem:[%s5471_s18 + $0xd0] sm:$0x3 pattern:$0x76325410] }
  0x47   : > { %v1084_v30 = vcombine.low %v1076_v36, %v1083_v4  ;;  %v1117_v15 = vrot.slane %v1103_v5, %v5511_v27  ;;  %v738_v16 = vrot.slane %v724_v6, %v5511_v27  ;;  %v741_v17 = vcombine.high %v399_v29, %v399_v29 }
  0x48   : > { %v1100_v18 = vrot.slane %v1086_v10, %v5511_v27  ;;  %v1102_v20 = vcombine.low %v714_v1, %v716_v8  ;;  %v748_v21 = vrot.slane %v399_v29, %v5511_v27  ;;  %v765_v37 = vcombine.high %v401_v7, %v401_v7 }
  0x49   : > { %5020 = vmatmul.mubr.bf16.gmra.mxu0 %v1257_v62  ;;  %v1258_v38 = vpack.c.bf16 %v1084_v30, %v1067_v3  ;;  %v740_v25 = vcombine.high %v738_v16, %v738_v16  ;;  %v755_v33 = vrot.slane %v741_v17, %v5511_v27  ;;  %v1119_v39 = vcombine.low %v739_v19, %v738_v16  ;;  %v4784_v19 = vld.sshfl [vmem:[%s5471_s18 + $0xe8] sm:$0x3 pattern:$0x76325410] }
  0x4a   : > { %v1101_v41 = vcombine.low %v1093_v11, %v1100_v18  ;;  %v1110_v42 = vrot.slane %v1102_v20, %v5511_v27  ;;  %v756_v12 = vcombine.high %v748_v21, %v748_v21  ;;  %v772_v22 = vrot.slane %v401_v7, %v5511_v27 }
  0x4b   : > { %5023 = vmatprep.mubr.bf16.mxu0 %v1258_v38  ;;  %v757_v44 = vcombine.high %v755_v33, %v755_v33  ;;  %v1120_v26 = vcombine.low %v740_v25, %v748_v21  ;;  %v1127_v34 = vrot.slane %v1119_v39, %v5511_v27  ;;  %v779_v45 = vrot.slane %v765_v37, %v5511_v27 }
  0x4c   : > { %v1118_v46 = vcombine.low %v1110_v42, %v1117_v15  ;;  %v1136_v47 = vcombine.low %v756_v12, %v755_v33  ;;  %v780_v48 = vcombine.high %v772_v22, %v772_v22  ;;  %v782_v13 = vcombine.high %v402_v40, %v402_v40 }
  0x4d   : > { %v1134_v24 = vrot.slane %v1120_v26, %v5511_v27  ;;  %v1137_v49 = vcombine.low %v757_v44, %v4782_v43  ;;  %v781_v50 = vcombine.high %v779_v45, %v779_v45  ;;  %v789_v52 = vrot.slane %v402_v40, %v5511_v27 }
  0x4e   : > { %v1259_v53 = vpack.c.bf16 %v1118_v46, %v1101_v41  ;;  %v1144_v54 = vrot.slane %v1136_v47, %v5511_v27  ;;  %v796_v55 = vrot.slane %v782_v13, %v5511_v27  ;;  %v1153_v31 = vcombine.low %v772_v22, %v780_v48 }
  0x4f   : > { %v1135_v56 = vcombine.low %v1127_v34, %v1134_v24  ;;  %v1151_v57 = vrot.slane %v1137_v49, %v5511_v27  ;;  %v797_v14 = vcombine.high %v789_v52, %v789_v52  ;;  %v1154_v28 = vcombine.low %v779_v45, %v781_v50  ;;  %v6096_v49 = vld [vmem:[%s7320_s3] ss:$0 sm:$0xff] }
  0x50   : > { %v798_v58 = vcombine.high %v796_v55, %v796_v55  ;;  %v1161_v59 = vrot.slane %v1153_v31, %v5511_v27  ;;  %v806_v60 = vcombine.high %v404_v51, %v404_v51  ;;  %v813_v61 = vrot.slane %v404_v51, %v5511_v27 }
  0x51   : > { %5024 = vmatmul.mubr.bf16.gmra.mxu0 %v1259_v53  ;;  %v1152_v62 = vcombine.low %v1144_v54, %v1151_v57  ;;  %v1168_v63 = vrot.slane %v1154_v28, %v5511_v27  ;;  %v1170_v0 = vcombine.low %v789_v52, %v797_v14  ;;  %v823_v36 = vcombine.high %v405_v35, %v405_v35 }
  0x52   : > { %v1171_v1 = vcombine.low %v796_v55, %v798_v58  ;;  %v820_v2 = vrot.slane %v806_v60, %v5511_v27  ;;  %v821_v23 = vcombine.high %v813_v61, %v813_v61  ;;  %v830_v29 = vrot.slane %v405_v35, %v5511_v27 }
  0x53   : > { %v1260_v3 = vpack.c.bf16 %v1152_v62, %v1135_v56  ;;  %v1169_v4 = vcombine.low %v1161_v59, %v1168_v63  ;;  %v1178_v5 = vrot.slane %v1170_v0, %v5511_v27  ;;  %v837_v6 = vrot.slane %v823_v36, %v5511_v27 }
  0x54   : > { %v1185_v7 = vrot.slane %v1171_v1, %v5511_v27  ;;  %v822_v8 = vcombine.high %v820_v2, %v820_v2  ;;  %v838_v10 = vcombine.high %v830_v29, %v830_v29  ;;  %v1187_v11 = vcombine.low %v4783_v32, %v813_v61 }
  0x55   : > { %5027 = vmatprep.mubr.bf16.mxu0 %v1260_v3  ;;  %v1188_v30 = vcombine.low %v821_v23, %v820_v2  ;;  %v839_v15 = vcombine.high %v837_v6, %v837_v6  ;;  %v5678_v12 = vstv %s4773_s23  ;;  %v5682_v44 = vadd.s32 16, %v5478_v9  ;;  %s4890_s23 = sshll.u32 %s5300_s16, 4 }
  0x56   : > { %v1186_v16 = vcombine.low %v1178_v5, %v1185_v7  ;;  %v1195_v17 = vrot.slane %v1187_v11, %v5511_v27  ;;  %v1204_v18 = vcombine.low %v822_v8, %v830_v29  ;;  %v1205_v20 = vcombine.low %v838_v10, %v837_v6  ;;  %s4681_s28 = sadd.s32 %s4890_s23, %s4886_s22 }
  0x57   : > { %v1202_v21 = vrot.slane %v1188_v30, %v5511_v27  ;;  %v1221_v37 = vcombine.low %v839_v15, %v4784_v19  ;;  %v2035_v22 = vadd.s32 1, %v5678_v12  ;;  %7354 = vst [vmem:[#allocation9_spill] sm:$0xff] %v5682_v44  ;;  %vm2048_vm0 = vcmp.gt.s32.totalorder %v5678_v12, 0  ;;  %s4887_s16 = sshll.u32 %s4681_s28, 7 }
  0x58   : > { %v1261_v38 = vpack.c.bf16 %v1186_v16, %v1169_v4  ;;  %v1212_v25 = vrot.slane %v1204_v18, %v5511_v27  ;;  %v1219_v33 = vrot.slane %v1205_v20, %v5511_v27  ;;  %vm2058_vm1 = vcmp.lt.s32.totalorder %v5678_v12, 17  ;;  %s7258_s29 = scalar_lea.hbm %s7327_s10, %s4887_s16 }
  0x59   : > { %v1203_v39 = vcombine.low %v1195_v17, %v1202_v21  ;;  %v1228_v41 = vrot.slane %v1221_v37, %v5511_v27  ;;  %vm2049_vm2 = vcmp.gt.s32.totalorder %v2035_v22, 0  ;;  %vm2059_vm3 = vcmp.lt.s32.totalorder %v2035_v22, 17  ;;  %vm5686_vm4 = vmand %vm2048_vm0, %vm2058_vm1 }
  0x5a   : > { %5028 = vmatmul.mubr.bf16.gmra.mxu0 %v1261_v38  ;;  %v1220_v40 = vcombine.low %v1212_v25, %v1219_v33  ;;  %v5319_v26 = vmov 269488144   ;;  %v5320_v45 = vmov 842150450   ;;  %v5321_v47 = vmov 1414812756   ;;  %vm5692_vm6 = vmand %vm2049_vm2, %vm2059_vm3 }
  0x5b   : > { %v1263_v43 = vpack.c.bf16 %v1228_v41, %v1228_v41  ;;  %v2235_v34 = vunpack.c.l.s4 %v5319_v26  ;;  %v2242_v46 = vunpack.c.l.s4 %v5320_v45  ;;  %v2249_v48 = vunpack.c.l.s4 %v5321_v47  ;;  %vm2084_vm9 = vmand %vm5692_vm6, %vm2078_vm7 }
  0x5c   : > { %v1262_v42 = vpack.c.bf16 %v1220_v40, %v1203_v39  ;;  %vm2113_vm5 = vcmp.lt.s32.totalorder %v5682_v44, 17  ;;  %v2036_v24 = vadd.s32 2, %v5678_v12  ;;  %v5322_v51 = vmov 1987475062   ;;  %vm2081_vm12 = vmand %vm5686_vm4, %vm2078_vm7 }
  0x5d   : > { %v2236_v50 = vunpack.c.0.s8 %v2235_v34  ;;  %v2243_v52 = vunpack.c.0.s8 %v2242_v46  ;;  %v2256_v53 = vunpack.c.l.s4 %v5322_v51  ;;  %vm2116_vm8 = vmand %vm5686_vm4, %vm2113_vm5  ;;  %v2250_v54 = vunpack.c.0.s8 %v2249_v48 }
  0x5e   : > { %5031 = vmatprep.mubr.bf16.mxu0 %v1262_v42  ;;  %vm2050_vm10 = vcmp.gt.s32.totalorder %v2036_v24, 0  ;;  %vm2060_vm11 = vcmp.lt.s32.totalorder %v2036_v24, 17  ;;  %v2037_v55 = vadd.s32 3, %v5678_v12  ;;  %v7332_v57 = vmov 0.0  }
  0x5f   : > { %v5711_v31 = vsub.s32 %v2236_v50, %v5478_v9  ;;  %v5714_v35 = vsub.s32 %v2243_v52, %v5478_v9  ;;  %v2257_v56 = vunpack.c.0.s8 %v2256_v53  ;;  %v5717_v14 = vsel %vm2116_vm8, 1.0, %v7332_v57  ;;  %vm5725_vm13 = vmand %vm2050_vm10, %vm2060_vm11 }
  0x60   : > { %v5720_v28 = vsel %vm2084_vm9, 1.0, %v7332_v57  ;;  %v5723_v58 = vsub.s32 %v2250_v54, %v5478_v9  ;;  %v5730_v60 = vsel %vm2081_vm12, 1.0, %v7332_v57  ;;  %vm2051_vm14 = vcmp.gt.s32.totalorder %v2037_v55, 0  ;;  %vm5747_vm0 = vmand %vm5725_vm13, %vm2113_vm5 }
  0x61   : > { %vm2061_vm15 = vcmp.lt.s32.totalorder %v2037_v55, 17  ;;  %v2038_v61 = vadd.s32 4, %v5678_v12  ;;  %v2039_v62 = vadd.s32 5, %v5678_v12  ;;  %v2303_v0 = vrot.slane %v5720_v28, %v5711_v31  ;;  %vm5777_vm2 = vmand %vm5725_vm13, %vm2078_vm7 }
  0x62   : > { %5032 = vmatmul.mubr.bf16.gmra.mxu0 %v1263_v43  ;;  %v2310_v32 = vrot.slane %v5720_v28, %v5714_v35  ;;  %v5741_v36 = vsub.s32 %v2257_v56, %v5478_v9  ;;  %v2247_v23 = vrot.slane %v5730_v60, %v5714_v35  ;;  %v2254_v29 = vrot.slane %v5730_v60, %v5723_v58  ;;  %vm5762_vm1 = vmand %vm2051_vm14, %vm2061_vm15 }
  0x63   : > { %v5760_v3 = vsel %vm5692_vm6, 1.0, %v7332_v57  ;;  %v2317_v5 = vrot.slane %v5720_v28, %v5723_v58  ;;  %v5771_v6 = vsel %vm5686_vm4, 1.0, %v7332_v57  ;;  %vm2052_vm3 = vcmp.gt.s32.totalorder %v2038_v61, 0  ;;  %vm5792_vm4 = vmand %vm5692_vm6, %vm2113_vm5 }
  0x64   : > { %vm2062_vm8 = vcmp.lt.s32.totalorder %v2038_v61, 17  ;;  %v5786_v10 = vsel %vm5725_vm13, 1.0, %v7332_v57  ;;  %vm2053_vm9 = vcmp.gt.s32.totalorder %v2039_v62, 0  ;;  %vm2063_vm10 = vcmp.lt.s32.totalorder %v2039_v62, 17  ;;  %vm2090_vm6 = vmand %vm5762_vm1, %vm2078_vm7 }
  0x65   : > { %v2324_v19 = vrot.slane %v5720_v28, %v5741_v36  ;;  %v5803_v15 = vsel %vm5747_vm0, 1.0, %v7332_v57  ;;  %v2040_v16 = vadd.s32 6, %v5678_v12  ;;  %v5819_v21 = vsel %vm5777_vm2, 1.0, %v7332_v57  ;;  %vm5823_vm11 = vmand %vm2052_vm3, %vm2062_vm8 }
  0x66   : > { %v5836_v39 = vsel %vm5792_vm4, 1.0, %v7332_v57  ;;  %vm5840_vm12 = vmand %vm2053_vm9, %vm2063_vm10  ;;  %v5851_v22 = vsel %vm2090_vm6, 1.0, %v7332_v57  ;;  %v5870_v47 = vsel %vm5823_vm11, 1.0, %v7332_v57  ;;  %v5875_v48 = vsel %vm5762_vm1, 1.0, %v7332_v57 }
  0x67   : > { %vm5861_vm13 = vmand %vm5823_vm11, %vm2113_vm5  ;;  %vm2054_vm14 = vcmp.gt.s32.totalorder %v2040_v16, 0  ;;  %vm2064_vm15 = vcmp.lt.s32.totalorder %v2040_v16, 17  ;;  %v2042_v24 = vadd.s32 8, %v5678_v12  ;;  %v2041_v61 = vadd.s32 7, %v5678_v12 }
  0x68   : > { %vm5881_vm0 = vmand %vm5840_vm12, %vm2078_vm7  ;;  %v5925_v16 = vsel %vm5861_vm13, 1.0, %v7332_v57  ;;  %v5972_v7 = vsel %vm5840_vm12, 1.0, %v7332_v57  ;;  %v2043_v55 = vadd.s32 9, %v5678_v12  ;;  %v7389_v40 = vmov 0 }
  0x69   : > { %vm5898_vm2 = vmand %vm5823_vm11, %vm2078_vm7  ;;  %v5930_v37 = vsel %vm5881_vm0, 1.0, %v7332_v57  ;;  %vm2056_vm8 = vcmp.gt.s32.totalorder %v2042_v24, 0  ;;  %vm2066_vm4 = vcmp.lt.s32.totalorder %v2042_v24, 17  ;;  %vm2055_vm6 = vcmp.gt.s32.totalorder %v2041_v61, 0 }
  0x6a   : > { %vm5909_vm3 = vmand %vm2054_vm14, %vm2064_vm15  ;;  %v5941_v45 = vsel %vm5898_vm2, 1.0, %v7332_v57  ;;  %vm2065_vm11 = vcmp.lt.s32.totalorder %v2041_v61, 17  ;;  %v6065_v61 = vld [vmem:[%s7319_s2] ss:$0 sm:$0xff]  ;;  %v7407_v28 = vrot.slane %v5760_v3, %v5711_v31 }
  0x6b   : > { %vm5947_vm9 = vmand %vm5909_vm3, %vm2078_vm7  ;;  %v5987_v1 = vsel %vm5909_vm3, 1.0, %v7332_v57 }
  0x6c   : > { %vm5959_vm10 = vmand %vm5909_vm3, %vm2113_vm5  ;;  %v6007_v34 = vsel %vm5947_vm9, 1.0, %v7332_v57  ;;  %vm2057_vm3 = vcmp.gt.s32.totalorder %v2043_v55, 0 }
  0x6d   : > { %vm5976_vm13 = vmand %vm2056_vm8, %vm2066_vm4  ;;  %v6034_v62 = vsel %vm5959_vm10, 1.0, %v7332_v57  ;;  %vm2067_vm8 = vcmp.lt.s32.totalorder %v2043_v55, 17 }
  0x6e   : > { %vm5993_vm14 = vmand %vm5840_vm12, %vm2113_vm5  ;;  %7392 = vst [vmem:[#allocation11_spill] sm:$0xff] %v6034_v62  ;;  %v6074_v4 = vsel %vm5976_vm13, 1.0, %v7332_v57 }
  0x6f   : > { %vm6011_vm12 = vmand %vm2055_vm6, %vm2065_vm11  ;;  %v6047_v12 = vsel %vm5993_vm14, 1.0, %v7332_v57  ;;  %7394 = vst [vmem:[#allocation13_spill] sm:$0xff] %v6074_v4  ;;  %vm3594_vm6 = vsmask.f32 7424  ;;  %vm3896_vm14 = vcmask 785408  }
  0x70   : > { %v7390_v40 = vsel %vm6011_vm12, 4294967295, %v7389_v40  ;;  %vm2105_vm15 = vmand %vm5976_vm13, %vm2078_vm7  ;;  %7393 = vst [vmem:[#allocation12_spill] sm:$0xff] %v6047_v12  ;;  %v6112_v26 = vsel %vm6011_vm12, 1.0, %v7332_v57 }
  0x71   : > { %7391 = vst [vmem:[#allocation10_spill] sm:$0xff] %v7390_v40  ;;  %vm2125_vm0 = vmand %vm5762_vm1, %vm2113_vm5  ;;  %v6060_v24 = vsel %vm2105_vm15, 1.0, %v7332_v57 }
  0x72   : > { %vm2102_vm2 = vmand %vm6011_vm12, %vm2078_vm7  ;;  %v6077_v59 = vsel %vm2125_vm0, 1.0, %v7332_v57  ;;  %7398 = vst [vmem:[#allocation15_spill] sm:$0xff] %v6112_v26 }
  0x73   : > { %7395 = vst [vmem:[#allocation14_spill] sm:$0xff] %v6077_v59  ;;  %v6086_v54 = vsel %vm2102_vm2, 1.0, %v7332_v57  ;;  %vm6089_vm1 = vmand %vm2057_vm3, %vm2067_vm8 }
  0x74   : > { %vm6120_vm4 = vmand %vm6089_vm1, %vm2113_vm5 }
  0x75   : > { %vm2108_vm9 = vmand %vm6089_vm1, %vm2078_vm7  ;;  %v6158_v13 = vsel %vm6120_vm4, 1.0, %v7332_v57  ;;  %vm3723_vm7 = vcmask 1046528  }
  0x76   : > { %vm2140_vm10 = vmand %vm5976_vm13, %vm2113_vm5  ;;  %7402 = vst [vmem:[#allocation17_spill] sm:$0xff] %v6158_v13  ;;  %v6163_v9 = vsel %vm2108_vm9, 1.0, %v7332_v57  ;;  %vm3879_vm13 = vcmask 523264  }
  0x77   : > { %7403 = vst [vmem:[#allocation18_spill] sm:$0xff] %v6163_v9  ;;  %v6172_v41 = vsel %vm2140_vm10, 1.0, %v7332_v57  ;;  %vm2137_vm11 = vmand %vm6011_vm12, %vm2113_vm5  ;;  %vm3862_vm5 = vcmask 261120  }
  0x78   : > { %7404 = vst [vmem:[#allocation19_spill] sm:$0xff] %v6172_v41 }
  0xf9   : > { %v5013_v51 = vpop.f32.mrf.mxu0 }
  0xfa   : > { %v1465_v52 = vmul.f32 %v5013_v51, %v6065_v61 }
  0xfb   : > { %v1362_v51 = vpop.f32.mrf.mxu0 }
  0xfc   : > { %v1495_v43 = vadd.f32 %v6096_v49, %v1465_v52  ;;  %v1463_v42 = vmul.f32 %v6065_v61, %v1362_v51  ;;  %v6153_v51 = vsel %vm6089_vm1, 1.0, %v7332_v57 }
  0xfd   : > { %v5014_v11 = vpop.f32.mrf.mxu0  ;;  %7401 = vst [vmem:[#allocation16_spill] sm:$0xff] %v6153_v51 }
  0xfe   : > { %v1518_v55 = vmax.f32 %v1495_v43, 0.0  ;;  %v1493_v56 = vadd.f32 %v6096_v49, %v1463_v42  ;;  %v1466_v50 = vmul.f32 %v5014_v11, %v6065_v61 }
  0xff   : > { %v1365_v33 = vpop.f32.mrf.mxu0 }
 0x100   : > { %v1596_v43 = vcombine.high %v1518_v55, %v1518_v55  ;;  %v1603_v42 = vrot.slane %v1518_v55, %v5511_v27  ;;  %v1516_v11 = vmax.f32 %v1493_v56, 0.0  ;;  %v1496_v38 = vadd.f32 %v6096_v49, %v1466_v50 }
 0x101   : > { %v1464_v25 = vmul.f32 %v6065_v61, %v1365_v33  ;;  %v5017_v18 = vpop.f32.mrf.mxu0 }
 0x102   : > { %v1610_v57 = vrot.slane %v1596_v43, %v5511_v27  ;;  %v1611_v20 = vcombine.high %v1603_v42, %v1603_v42  ;;  %v1562_v63 = vcombine.high %v1516_v11, %v1516_v11  ;;  %v1569_v50 = vrot.slane %v1516_v11, %v5511_v27 }
 0x103   : > { %v1519_v33 = vmax.f32 %v1496_v38, 0.0  ;;  %v1494_v56 = vadd.f32 %v6096_v49, %v1464_v25  ;;  %v1378_v17 = vpop.f32.mrf.mxu0  ;;  %v1469_v30 = vmul.f32 %v5017_v18, %v6065_v61 }
 0x104   : > { %v1612_v53 = vcombine.high %v1610_v57, %v1610_v57  ;;  %v2963_v46 = vmul.f32 %v2303_v0, %v1611_v20  ;;  %v1576_v43 = vrot.slane %v1562_v63, %v5511_v27  ;;  %v2964_v11 = vmul.f32 %v2310_v32, %v1610_v57 }
 0x105   : > { %v1577_v38 = vcombine.high %v1569_v50, %v1569_v50  ;;  %v1613_v55 = vcombine.high %v1519_v33, %v1519_v33  ;;  %v1620_v25 = vrot.slane %v1519_v33, %v5511_v27  ;;  %v5018_v2 = vpop.f32.mrf.mxu0  ;;  %v1517_v0 = vmax.f32 %v1494_v56, 0.0 }
 0x106   : > { %v1578_v8 = vcombine.high %v1576_v43, %v1576_v43  ;;  %v2965_v52 = vmul.f32 %v2317_v5, %v1612_v53  ;;  %v2956_v5 = vmul.f32 %v2254_v29, %v1576_v43  ;;  %v7405_v53 = vrot.slane %v5730_v60, %v5741_v36 }
 0x107   : > { %v2955_v57 = vmul.f32 %v2247_v23, %v1577_v38  ;;  %v6210_v32 = vrot.slane %v1613_v55, %v5511_v27  ;;  %v1628_v18 = vcombine.high %v1620_v25, %v1620_v25  ;;  %v2966_v20 = vmul.f32 %v2324_v19, %v1620_v25  ;;  %v1381_v33 = vpop.f32.mrf.mxu0 }
 0x108   : > { %v2957_v63 = vmul.f32 %v7405_v53, %v1578_v8  ;;  %v1499_v23 = vadd.f32 %v6096_v49, %v1469_v30  ;;  %v3175_v38 = vcombine.low %v2963_v46, %v2964_v11  ;;  %v7406_v55 = vrot.slane %v5730_v60, %v5711_v31 }
 0x109   : > { %v2967_v19 = vmul.f32 %v7407_v28, %v1628_v18  ;;  %v7408_v29 = vrot.slane %v5760_v3, %v5714_v35  ;;  %v5021_v25 = vpop.f32.mrf.mxu0  ;;  %v3176_v8 = vcombine.low %v2965_v52, %v2966_v20  ;;  %v1579_v56 = vcombine.high %v1517_v0, %v1517_v0 }
 0x10a   : > { %v2954_v41 = vmul.f32 %v7406_v55, %v1569_v50  ;;  %v3135_v13 = vcombine.low %v2956_v5, %v2957_v63  ;;  %v1586_v30 = vrot.slane %v1517_v0, %v5511_v27  ;;  %v1522_v11 = vmax.f32 %v1499_v23, 0.0 }
 0x10b   : > { %v2968_v43 = vmul.f32 %v7408_v29, %v6210_v32  ;;  %v6233_v53 = vpop.f32.mrf.mxu0  ;;  %v1593_v55 = vrot.slane %v1579_v56, %v5511_v27  ;;  %v1467_v63 = vmul.f32 %v6065_v61, %v1378_v17  ;;  %v7409_v5 = vrot.slane %v5717_v14, %v5711_v31 }
 0x10c   : > { %v3134_v46 = vcombine.low %v2954_v41, %v2955_v57  ;;  %v1594_v28 = vcombine.high %v1586_v30, %v1586_v30  ;;  %v6242_v52 = vrot.slane %v3135_v13, %v5511_v27  ;;  %v6245_v41 = vrot.slane %v3176_v8, %v5511_v27 }
 0x10d   : > { %v3192_v18 = vcombine.low %v2967_v19, %v2968_v43  ;;  %v1664_v0 = vcombine.high %v1522_v11, %v1522_v11  ;;  %v1671_v57 = vrot.slane %v1522_v11, %v5511_v27  ;;  %v6248_v20 = vpop.f32.mrf.mxu0  ;;  %v6253_v23 = vmul.f32 %v7409_v5, %v1603_v42 }
 0x10e   : > { %v6256_v19 = vrot.slane %v3175_v38, %v5511_v27  ;;  %v1595_v17 = vcombine.high %v1593_v55, %v1593_v55  ;;  %v7410_v13 = vrot.slane %v5771_v6, %v5714_v35  ;;  %v6262_v43 = vrot.slane %v3134_v46, %v5511_v27 }
 0x10f   : > { %v1629_v8 = vcombine.high %v6210_v32, %v6210_v32  ;;  %v1678_v56 = vrot.slane %v1664_v0, %v5511_v27  ;;  %v1679_v11 = vcombine.high %v1671_v57, %v1671_v57  ;;  %v6267_v14 = vpop.f32.mrf.mxu0  ;;  %v6270_v42 = vrot.slane %v3192_v18, %v5511_v27 }
 0x110   : > { %v2959_v29 = vmul.f32 %v7410_v13, %v1594_v28  ;;  %v7411_v38 = vrot.slane %v5771_v6, %v5711_v31  ;;  %v7412_v28 = vrot.slane %v5771_v6, %v5741_v36  ;;  %v1497_v13 = vadd.f32 %v6096_v49, %v1467_v63 }
 0x111   : > { %v7413_v18 = vrot.slane %v5771_v6, %v5723_v58  ;;  %v1470_v60 = vmul.f32 %v5018_v2, %v6065_v61  ;;  %v1468_v63 = vmul.f32 %v6065_v61, %v1381_v33  ;;  %v1680_v32 = vcombine.high %v1678_v56, %v1678_v56 }
 0x112   : > { %v2958_v5 = vmul.f32 %v7411_v38, %v1586_v30  ;;  %v2961_v46 = vmul.f32 %v7412_v28, %v1595_v17  ;;  %v7414_v30 = vrot.slane %v5786_v10, %v5741_v36  ;;  %v1520_v17 = vmax.f32 %v1497_v13, 0.0  ;;  %v6291_v28 = vpop.f32.mrf.mxu0 }
 0x113   : > { %v2960_v50 = vmul.f32 %v7413_v18, %v1593_v55  ;;  %v7415_v0 = vrot.slane %v5786_v10, %v5723_v58  ;;  %v1500_v6 = vadd.f32 %v6096_v49, %v1470_v60  ;;  %v1473_v55 = vmul.f32 %v5021_v25, %v6065_v61 }
 0x114   : > { %v3151_v40 = vcombine.low %v2958_v5, %v2959_v29  ;;  %v2979_v38 = vmul.f32 %v7414_v30, %v1679_v11  ;;  %v1630_v29 = vcombine.high %v1520_v17, %v1520_v17  ;;  %v1637_v5 = vrot.slane %v1520_v17, %v5511_v27  ;;  %v6300_v13 = vpop.f32.mrf.mxu0 }
 0x115   : > { %v2978_v44 = vmul.f32 %v7415_v0, %v1671_v57  ;;  %v3152_v2 = vcombine.low %v2960_v50, %v2961_v46  ;;  %v1498_v11 = vadd.f32 %v6096_v49, %v1468_v63  ;;  %v7416_v33 = vrot.slane %v5803_v15, %v5711_v31 }
 0x116   : > { %v7417_v57 = vrot.slane %v5760_v3, %v5723_v58  ;;  %v1523_v60 = vmax.f32 %v1500_v6, 0.0  ;;  %v1503_v25 = vadd.f32 %v6096_v49, %v1473_v55  ;;  %v6312_v50 = vrot.slane %v3151_v40, %v5511_v27  ;;  %v6318_v15 = vpop.f32.mrf.mxu0 }
 0x117   : > { %v6305_v18 = vmul.f32 %v7416_v33, %v1678_v56  ;;  %v3234_v46 = vcombine.low %v2978_v44, %v2979_v38  ;;  %v1644_v30 = vrot.slane %v1630_v29, %v5511_v27  ;;  %v7418_v17 = vrot.slane %v5760_v3, %v5741_v36 }
 0x118   : > { %v2969_v0 = vmul.f32 %v7417_v57, %v1629_v8  ;;  %v1681_v56 = vcombine.high %v1523_v60, %v1523_v60  ;;  %v1688_v33 = vrot.slane %v1523_v60, %v5511_v27  ;;  %v1521_v9 = vmax.f32 %v1498_v11, 0.0 }
 0x119   : > { %v2970_v63 = vmul.f32 %v7418_v17, %v1637_v5  ;;  %v1526_v8 = vmax.f32 %v1503_v25, 0.0  ;;  %v6322_v6 = vrot.slane %v3152_v2, %v5511_v27  ;;  %v1645_v55 = vcombine.high %v1637_v5, %v1637_v5  ;;  %v6337_v25 = vpop.f32.mrf.mxu0 }
 0x11a   : > { %v1646_v40 = vcombine.high %v1644_v30, %v1644_v30  ;;  %v7419_v44 = vrot.slane %v5851_v22, %v5711_v31  ;;  %v1695_v3 = vrot.slane %v1681_v56, %v5511_v27  ;;  %v1696_v57 = vcombine.high %v1688_v33, %v1688_v33 }
 0x11b   : > { %v3193_v29 = vcombine.low %v2969_v0, %v2970_v63  ;;  %v1647_v17 = vcombine.high %v1521_v9, %v1521_v9  ;;  %v6329_v51 = vrot.slane %v3234_v46, %v5511_v27  ;;  %v7420_v11 = vrot.slane %v5851_v22, %v5714_v35 }
 0x11c   : > { %v2981_v38 = vmul.f32 %v7419_v44, %v1680_v32  ;;  %v1654_v2 = vrot.slane %v1521_v9, %v5511_v27  ;;  %v1471_v5 = vmul.f32 %v6065_v61, %v6233_v53  ;;  %v7421_v32 = vrot.slane %v5819_v21, %v5714_v35 }
 0x11d   : > { %v2982_v60 = vmul.f32 %v7420_v11, %v1688_v33  ;;  %v7422_v63 = vrot.slane %v5851_v22, %v5723_v58  ;;  %v7423_v56 = vrot.slane %v5851_v22, %v5741_v36  ;;  %v1732_v33 = vcombine.high %v1526_v8, %v1526_v8 }
 0x11e   : > { %v2973_v0 = vmul.f32 %v7421_v32, %v1646_v40  ;;  %v7424_v53 = vrot.slane %v5836_v39, %v5711_v31  ;;  %v1661_v62 = vrot.slane %v1647_v17, %v5511_v27  ;;  %v1662_v40 = vcombine.high %v1654_v2, %v1654_v2  ;;  %v6356_v32 = vpop.f32.mrf.mxu0 }
 0x11f   : > { %v2983_v46 = vmul.f32 %v7422_v63, %v1696_v57  ;;  %v2984_v44 = vmul.f32 %v7423_v56, %v1695_v3  ;;  %v7425_v57 = vrot.slane %v5819_v21, %v5711_v31  ;;  %v6362_v22 = vrot.slane %v3193_v29, %v5511_v27 }
 0x120   : > { %v6353_v11 = vmul.f32 %v7424_v53, %v1645_v55  ;;  %v1697_v56 = vcombine.high %v1695_v3, %v1695_v3  ;;  %v1739_v9 = vrot.slane %v1526_v8, %v5511_v27  ;;  %v3257_v26 = vcombine.low %v2981_v38, %v2982_v60  ;;  %v6371_v59 = vpop.f32.mrf.mxu0 }
 0x121   : > { %v2972_v63 = vmul.f32 %v7425_v57, %v1644_v30  ;;  %v1663_v4 = vcombine.high %v1661_v62, %v1661_v62  ;;  %v7426_v39 = vrot.slane %v5819_v21, %v5723_v58  ;;  %v7427_v17 = vrot.slane %v5819_v21, %v5741_v36 }
 0x122   : > { %v3258_v30 = vcombine.low %v2983_v46, %v2984_v44  ;;  %v1746_v29 = vrot.slane %v1732_v33, %v5511_v27  ;;  %v1747_v57 = vcombine.high %v1739_v9, %v1739_v9  ;;  %v7428_v8 = vrot.slane %v5786_v10, %v5711_v31  ;;  %v6381_v21 = vpop.f32.mrf.mxu0 }
 0x123   : > { %v2974_v55 = vmul.f32 %v7426_v39, %v1654_v2  ;;  %v2975_v53 = vmul.f32 %v7427_v17, %v1662_v40  ;;  %v3216_v12 = vcombine.low %v2972_v63, %v2973_v0  ;;  %v7429_v3 = vrot.slane %v5786_v10, %v5714_v35 }
 0x124   : > { %v2976_v38 = vmul.f32 %v7428_v8, %v1661_v62  ;;  %v1501_v39 = vadd.f32 %v6096_v49, %v1471_v5  ;;  %v1748_v40 = vcombine.high %v1746_v29, %v1746_v29  ;;  %v7430_v0 = vrot.slane %v5870_v47, %v5711_v31  ;;  %v6397_v17 = vpop.f32.mrf.mxu0 }
 0x125   : > { %v2977_v60 = vmul.f32 %v7429_v3, %v1663_v4  ;;  %v3217_v2 = vcombine.low %v2974_v55, %v2975_v53  ;;  %v7431_v44 = vrot.slane %v5870_v47, %v5714_v35  ;;  %v7432_v62 = vrot.slane %v5870_v47, %v5723_v58 }
 0x126   : > { %v2994_v46 = vmul.f32 %v7430_v0, %v1739_v9  ;;  %v6393_v10 = vrot.slane %v3257_v26, %v5511_v27  ;;  %v1524_v5 = vmax.f32 %v1501_v39, 0.0  ;;  %v1474_v55 = vmul.f32 %v6248_v20, %v6065_v61 }
 0x127   : > { %v2995_v33 = vmul.f32 %v7431_v44, %v1747_v57  ;;  %v2996_v63 = vmul.f32 %v7432_v62, %v1746_v29  ;;  %v3233_v4 = vcombine.low %v2976_v38, %v2977_v60  ;;  %v3224_v9 = vrot.slane %v3216_v12, %v5511_v27  ;;  %v6410_v60 = vpop.f32.mrf.mxu0 }
 0x128   : > { %v7433_v53 = vrot.slane %v5870_v47, %v5741_v36  ;;  %v1472_v8 = vmul.f32 %v6065_v61, %v6267_v14  ;;  %v1477_v26 = vmul.f32 %v6291_v28, %v6065_v61  ;;  %v3231_v29 = vrot.slane %v3217_v2, %v5511_v27 }
 0x129   : > { %v3241_v38 = vrot.slane %v3233_v4, %v5511_v27  ;;  %v1698_v3 = vcombine.high %v1524_v5, %v1524_v5  ;;  %v1705_v20 = vrot.slane %v1524_v5, %v5511_v27  ;;  %v3315_v12 = vcombine.low %v2994_v46, %v2995_v33  ;;  %v6423_v62 = vpop.f32.mrf.mxu0 }
 0x12a   : > { %v2997_v57 = vmul.f32 %v7433_v53, %v1748_v40  ;;  %v1504_v47 = vadd.f32 %v6096_v49, %v1474_v55  ;;  %v1502_v40 = vadd.f32 %v6096_v49, %v1472_v8  ;;  %v6415_v14 = vrot.slane %v3258_v30, %v5511_v27  ;;  %v5202_v30 = vld [vmem:[%s7321_s4 + $0x78] sm:$0xff]  }
 0x12b   : > { %v6418_v28 = vrot.slane %v1698_v3, %v5511_v27  ;;  %v1713_v2 = vcombine.high %v1705_v20, %v1705_v20  ;;  %v7434_v0 = vrot.slane %v5875_v48, %v5711_v31  ;;  %v7435_v46 = vrot.slane %v5875_v48, %v5714_v35  ;;  %v5203_v55 = vld [vmem:[%s7321_s4 + $0x38] sm:$0xff]   ;;  %4911 = vmatprep.subr.bf16.mxu0 %v5202_v30 }
 0x12c   : > { %v3316_v39 = vcombine.low %v2996_v63, %v2997_v57  ;;  %v1527_v63 = vmax.f32 %v1504_v47, 0.0  ;;  %v1525_v4 = vmax.f32 %v1502_v40, 0.0  ;;  %v1507_v5 = vadd.f32 %v6096_v49, %v1477_v26  ;;  %4912 = vmatpush3.bf16.msra.mxu0 %v5203_v55  ;;  %5075 = vmatprep.subr.bf16.mxu1 %v5202_v30 }
 0x12d   : > { %v2985_v44 = vmul.f32 %v7434_v0, %v1697_v56  ;;  %v2986_v33 = vmul.f32 %v7435_v46, %v1705_v20  ;;  %v3232_v53 = vcombine.low %v3224_v9, %v3231_v29  ;;  %v3249_v56 = vcombine.low %v3241_v38, %v6329_v51  ;;  %v5034_v20 = vpop.f32.mrf.mxu0  ;;  %5083 = vmatpush3.bf16.msra.mxu1 %v5203_v55 }
 0x12e   : > { %v7436_v57 = vrot.slane %v5875_v48, %v5723_v58  ;;  %v7437_v3 = vrot.slane %v5875_v48, %v5741_v36  ;;  %v6444_v47 = vrot.slane %v3315_v12, %v5511_v27  ;;  %v6447_v40 = vrot.slane %v3316_v39, %v5511_v27 }
 0x12f   : > { %v1749_v0 = vcombine.high %v1527_v63, %v1527_v63  ;;  %v1756_v9 = vrot.slane %v1527_v63, %v5511_v27  ;;  %v1715_v29 = vcombine.high %v1525_v4, %v1525_v4  ;;  %v1722_v38 = vrot.slane %v1525_v4, %v5511_v27 }
 0x130   : > { %v2987_v8 = vmul.f32 %v7436_v57, %v1713_v2  ;;  %v2988_v26 = vmul.f32 %v7437_v3, %v6418_v28  ;;  %v1530_v2 = vmax.f32 %v1507_v5, 0.0  ;;  %v3208_v48 = vcombine.low %v6270_v42, %v6362_v22 }
 0x131   : > { %v3274_v46 = vcombine.low %v2985_v44, %v2986_v33  ;;  %v1763_v12 = vrot.slane %v1749_v0, %v5511_v27  ;;  %v1764_v57 = vcombine.high %v1756_v9, %v1756_v9  ;;  %v6456_v63 = vpack.c.bf16 %v3249_v56, %v3232_v53 }
 0x132   : > { %v3275_v51 = vcombine.low %v2987_v8, %v2988_v26  ;;  %v1729_v8 = vrot.slane %v1715_v29, %v5511_v27  ;;  %v1730_v3 = vcombine.high %v1722_v38, %v1722_v38  ;;  %v1800_v22 = vcombine.high %v1530_v2, %v1530_v2 }
 0x133   : > { %v7438_v44 = vrot.slane %v5930_v37, %v5711_v31  ;;  %v7439_v30 = vrot.slane %v5930_v37, %v5714_v35  ;;  %v7440_v56 = vrot.slane %v5941_v45, %v5714_v35  ;;  %v6476_v20 = vrot.slane %v3274_v46, %v5511_v27 }
 0x134   : > { %v6464_v42 = vrot.slane %v3275_v51, %v5511_v27  ;;  %v1731_v53 = vcombine.high %v1729_v8, %v1729_v8  ;;  %v1807_v0 = vrot.slane %v1530_v2, %v5511_v27  ;;  %v1814_v51 = vrot.slane %v1800_v22, %v5511_v27 }
 0x135   : > { %v2999_v33 = vmul.f32 %v7438_v44, %v1764_v57  ;;  %v3000_v55 = vmul.f32 %v7439_v30, %v1763_v12  ;;  %v2991_v26 = vmul.f32 %v7440_v56, %v1730_v3  ;;  %v1475_v29 = vmul.f32 %v6065_v61, %v6300_v13 }
 0x136   : > { %v1765_v57 = vcombine.high %v1763_v12, %v1763_v12  ;;  %v7441_v44 = vrot.slane %v5925_v16, %v5711_v31  ;;  %v7442_v5 = vrot.slane %v5941_v45, %v5711_v31  ;;  %v7443_v46 = vrot.slane %v5941_v45, %v5741_v36 }
 0x137   : > { %v7444_v13 = vrot.slane %v5941_v45, %v5723_v58  ;;  %v1815_v22 = vcombine.high %v1807_v0, %v1807_v0  ;;  %v1816_v4 = vcombine.high %v1814_v51, %v1814_v51  ;;  %v3339_v16 = vcombine.low %v2999_v33, %v3000_v55  ;;  %v5204_v33 = vld [vmem:[%s7321_s4 + $0x70] sm:$0xff]  }
 0x138   : > { %v6485_v30 = vmul.f32 %v7441_v44, %v1756_v9  ;;  %v2990_v3 = vmul.f32 %v7442_v5, %v1722_v38  ;;  %v2993_v56 = vmul.f32 %v7443_v46, %v1731_v53  ;;  %v7445_v44 = vrot.slane %v6007_v34, %v5723_v58  ;;  %v5205_v55 = vld [vmem:[%s7321_s4 + $0x30] sm:$0xff]   ;;  %4913 = vmatprep.subr.bf16.mxu0 %v5204_v33 }
 0x139   : > { %v2992_v12 = vmul.f32 %v7444_v13, %v1729_v8  ;;  %v1505_v38 = vadd.f32 %v6096_v49, %v1475_v29  ;;  %v7446_v53 = vrot.slane %v6007_v34, %v5741_v36  ;;  %v1478_v2 = vmul.f32 %v6318_v15, %v6065_v61  ;;  %4914 = vmatpush3.bf16.msra.mxu0 %v5205_v55 }
 0x13a   : > { %v3298_v9 = vcombine.low %v2990_v3, %v2991_v26  ;;  %v3010_v39 = vmul.f32 %v7445_v44, %v1807_v0  ;;  %v7447_v45 = vcombine.low %v6256_v19, %v6245_v41  ;;  %v7448_v26 = vrot.slane %v5987_v1, %v5711_v31  ;;  %5076 = vmatprep.subr.bf16.mxu1 %v5204_v33 }
 0x13b   : > { %v3299_v5 = vcombine.low %v2992_v12, %v2993_v56  ;;  %v3011_v46 = vmul.f32 %v7446_v53, %v1815_v22  ;;  %v7449_v15 = vrot.slane %v5987_v1, %v5714_v35  ;;  %v1528_v3 = vmax.f32 %v1505_v38, 0.0  ;;  %5084 = vmatpush3.bf16.msra.mxu1 %v5205_v55 }
 0x13c   : > { %v6510_v8 = vpack.c.bf16 %v3208_v48, %v7447_v45  ;;  %v3012_v0 = vmul.f32 %v7448_v26, %v1814_v51  ;;  %v1476_v41 = vmul.f32 %v6065_v61, %v6337_v25  ;;  %v7450_v19 = vrot.slane %v5930_v37, %v5723_v58 }
 0x13d   : > { %v3013_v29 = vmul.f32 %v7449_v15, %v1816_v4  ;;  %v1508_v56 = vadd.f32 %v6096_v49, %v1478_v2  ;;  %v3215_v51 = vrot.slane %v6353_v11, %v5511_v27  ;;  %v6535_v4 = vrot.slane %v3339_v16, %v5511_v27 }
 0x13e   : > { %v3001_v48 = vmul.f32 %v7450_v19, %v1765_v57  ;;  %3765 = vrot.lane.b32.xlu1 %v6510_v8, %s5324_s24  ;;  %v1766_v13 = vcombine.high %v1528_v3, %v1528_v3  ;;  %v1773_v25 = vrot.slane %v1528_v3, %v5511_v27  ;;  %v1506_v12 = vadd.f32 %v6096_v49, %v1476_v41 }
 0x13f   : > { %v6540_v57 = vrot.slane %v3298_v9, %v5511_v27  ;;  %v6543_v2 = vrot.slane %v3299_v5, %v5511_v27  ;;  %v3381_v22 = vcombine.low %v3010_v39, %v3011_v46  ;;  %v1531_v44 = vmax.f32 %v1508_v56, 0.0  ;;  %v5206_v39 = vld [vmem:[%s7321_s4 + $0x68] sm:$0xff]  }
 0x140   : > { %v3397_v11 = vcombine.low %v3012_v0, %v3013_v29  ;;  %v1780_v38 = vrot.slane %v1766_v13, %v5511_v27  ;;  %v1781_v16 = vcombine.high %v1773_v25, %v1773_v25  ;;  %v7451_v53 = vrot.slane %v5930_v37, %v5741_v36  ;;  %v5207_v5 = vld [vmem:[%s7321_s4 + $0x28] sm:$0xff]   ;;  %4915 = vmatprep.subr.bf16.mxu0 %v5206_v39 }
 0x141   : > { %v1817_v26 = vcombine.high %v1531_v44, %v1531_v44  ;;  %v1824_v15 = vrot.slane %v1531_v44, %v5511_v27  ;;  %v1529_v9 = vmax.f32 %v1506_v12, 0.0  ;;  %v6550_v3 = vpack.c.bf16 %v3215_v51, %v3215_v51  ;;  %4916 = vmatpush3.bf16.msra.mxu0 %v5207_v5  ;;  %5077 = vmatprep.subr.bf16.mxu1 %v5206_v39 }
 0x142   : > { %v3002_v45 = vmul.f32 %v7451_v53, %v1773_v25  ;;  %v1782_v46 = vcombine.high %v1780_v38, %v1780_v38  ;;  %v7452_v37 = vrot.slane %v5972_v7, %v5711_v31  ;;  %v7453_v55 = vrot.slane %v5972_v7, %v5714_v35  ;;  %5085 = vmatpush3.bf16.msra.mxu1 %v5207_v5 }
 0x143   : > { %v1832_v41 = vcombine.high %v1824_v15, %v1824_v15  ;;  %v7454_v19 = vrot.slane %v5987_v1, %v5723_v58  ;;  %v1783_v51 = vcombine.high %v1529_v9, %v1529_v9  ;;  %v3727_v13 = vrot.slane %v6510_v8, 1 }
 0x144   : > { %v3003_v33 = vmul.f32 %v7452_v37, %v1781_v16  ;;  %v3004_v0 = vmul.f32 %v7453_v55, %v1780_v38  ;;  %v3340_v29 = vcombine.low %v3001_v48, %v3002_v45  ;;  %v6570_v44 = vrot.slane %v1529_v9, %v5511_v27 }
 0x145   : > { %v3014_v56 = vmul.f32 %v7454_v19, %v1824_v15  ;;  %v7455_v16 = vrot.slane %v5972_v7, %v5723_v58  ;;  %v6576_v48 = vrot.slane %v3381_v22, %v5511_v27  ;;  %v7456_v53 = vrot.slane %v5987_v1, %v5741_v36  ;;  %v5208_v1 = vld [vmem:[%s7321_s4 + $0x60] sm:$0xff]  }
 0x146   : > { %v3354_v25 = vrot.slane %v3340_v29, %v5511_v27  ;;  %v3356_v12 = vcombine.low %v3003_v33, %v3004_v0  ;;  %v1797_v15 = vrot.slane %v1783_v51, %v5511_v27  ;;  %v3728_v37 = vrot.slane %v6550_v3, 1  ;;  %4917 = vmatprep.subr.bf16.mxu0 %v5208_v1  ;;  %5078 = vmatprep.subr.bf16.mxu1 %v5208_v1 }
 0x147   : > { %v3005_v38 = vmul.f32 %v7455_v16, %v1782_v46  ;;  %v3015_v45 = vmul.f32 %v7456_v53, %v1832_v41  ;;  %v6584_v9 = vrot.slane %v3397_v11, %v5511_v27  ;;  %v6588_v46 = vrot.slane %v1817_v26, %v5511_v27  ;;  %v5209_v11 = vld [vmem:[%s7321_s4 + $0x20] sm:$0xff]  }
 0x148   : > { %v3355_v33 = vcombine.low %v6535_v4, %v3354_v25  ;;  %v7457_v22 = vrot.slane %v5972_v7, %v5741_v36  ;;  %v1799_v4 = vcombine.high %v1797_v15, %v1797_v15  ;;  %v7458_v26 = vrot.slane %v6007_v34, %v5711_v31  ;;  %4918 = vmatpush3.bf16.msra.mxu0 %v5209_v11 }
 0x149   : > { %v3398_v39 = vcombine.low %v3014_v56, %v3015_v45  ;;  %v3729_v29 = vsel %vm3723_vm7, %v3727_v13, %v3728_v37  ;;  %v3364_v7 = vrot.slane %v3356_v12, %v5511_v27  ;;  %v3174_v5 = vrot.slane %v6253_v23, %v5511_v27  ;;  %5086 = vmatpush3.bf16.msra.mxu1 %v5209_v11  ;;  %v5211_v37 = vld [vmem:[%s7321_s4 + $0x18] sm:$0xff]  }
 0x14a   : > { %v3006_v55 = vmul.f32 %v7457_v22, %v6570_v44  ;;  %v3008_v0 = vmul.f32 %v7458_v26, %v1797_v15  ;;  %3797 = vrot.lane.b32.xlu0 %v3729_v29, %s5325_s19  ;;  %3750 = vrot.lane.b32.xlu1 %v3729_v29, %s5326_s25  ;;  %v3608_v19 = vshrl.u32 %v6510_v8, 16  ;;  %v7459_v51 = vrot.slane %v6007_v34, %v5714_v35  ;;  %v5210_v15 = vld [vmem:[%s7321_s4 + $0x58] sm:$0xff]   ;;  %v5213_v29 = vld [vmem:[%s7321_s4 + $0x10] sm:$0xff]  }
 0x14b   : > { %v3412_v56 = vrot.slane %v3398_v39, %v5511_v27  ;;  %v7460_v25 = vcombine.low %v6262_v43, %v6242_v52  ;;  %v7461_v12 = vcombine.low %v6312_v50, %v6322_v6  ;;  %v3575_v53 = vpack.c.bf16 %v3174_v5, %v3174_v5  ;;  %4919 = vmatprep.subr.bf16.mxu0 %v5210_v15 }
 0x14c   : > { %v3357_v41 = vcombine.low %v3005_v38, %v3006_v55  ;;  %v3009_v13 = vmul.f32 %v7459_v51, %v1799_v4  ;;  %v3610_v38 = vshll.u32 %v6510_v8, 16  ;;  %v3615_v45 = vshll.u32 %v6550_v3, 16  ;;  %5079 = vmatprep.subr.bf16.mxu1 %v5210_v15  ;;  %4920 = vmatpush3.bf16.msra.mxu0 %v5211_v37 }
 0x14d   : > { %v6620_v16 = vpack.c.bf16 %v7461_v12, %v7460_v25  ;;  %v1481_v34 = vmul.f32 %v6356_v32, %v6065_v61  ;;  %v3413_v52 = vcombine.low %v6584_v9, %v3412_v56  ;;  %v7462_v3 = vcombine.low %v6393_v10, %v6415_v14  ;;  %5087 = vmatpush3.bf16.msra.mxu1 %v5211_v37 }
 0x14e   : > { %v3371_v23 = vrot.slane %v3357_v41, %v5511_v27  ;;  %v3380_v43 = vcombine.low %v3008_v0, %v3009_v13  ;;  %v3612_v6 = vrot.slane %v3610_v38, 1  ;;  %v7463_v32 = vcombine.low %v6476_v20, %v6464_v42  ;;  %3767 = vrot.lane.b32.xlu1 %v6456_v63, %s5324_s24  ;;  %v5212_v0 = vld [vmem:[%s7321_s4 + $0x50] sm:$0xff]  }
 0x14f   : > { %v3724_v50 = vrot.slane %v6620_v16, 1  ;;  %v3314_v9 = vcombine.low %v6540_v57, %v6543_v2  ;;  %v3725_v1 = vrot.slane %v3575_v53, 1  ;;  %v1833_v11 = vcombine.high %v6588_v46, %v6588_v46  ;;  %4921 = vmatprep.subr.bf16.mxu0 %v5212_v0  ;;  %5080 = vmatprep.subr.bf16.mxu1 %v5212_v0 }
 0x150   : > { %v6641_v22 = vpack.c.bf16 %v7463_v32, %v7462_v3  ;;  %v3372_v55 = vcombine.low %v3364_v7, %v3371_v23  ;;  %v3388_v39 = vrot.slane %v3380_v43, %v5511_v27  ;;  %v3613_v4 = vor.u32 %v3612_v6, %v3608_v19  ;;  %4922 = vmatpush3.bf16.msra.mxu0 %v5213_v29 }
 0x151   : > { %v3598_v10 = vshll.u32 %v6620_v16, 16  ;;  %v3726_v42 = vsel %vm3723_vm7, %v3724_v50, %v3725_v1  ;;  %v1511_v20 = vadd.f32 %v6096_v49, %v1481_v34  ;;  %v1479_v26 = vmul.f32 %v6065_v61, %v6371_v59  ;;  %5088 = vmatpush3.bf16.msra.mxu1 %v5213_v29  ;;  %v5214_v29 = vld [vmem:[%s7321_s4 + $0x48] sm:$0xff]  }
 0x152   : > { %v6651_v14 = vpack.c.bf16 %v3372_v55, %v3355_v33  ;;  %v3396_v7 = vcombine.low %v3388_v39, %v6576_v48  ;;  %3748 = vrot.lane.b32.xlu0 %v3726_v42, %s5326_s25  ;;  %v3617_v33 = vrot.slane %v3615_v45, 1  ;;  %v3596_v41 = vshrl.u32 %v6620_v16, 16  ;;  %3816 = vrot.lane.b32.xlu1 %v6641_v22, %s5326_s25 }
 0x153   : > { %v3600_v5 = vrot.slane %v3598_v10, 1  ;;  %v3603_v59 = vshll.u32 %v3575_v53, 16  ;;  %v1534_v19 = vmax.f32 %v1511_v20, 0.0  ;;  %v1509_v56 = vadd.f32 %v6096_v49, %v1479_v26  ;;  %4923 = vmatprep.subr.bf16.mxu0 %v5214_v29  ;;  %5081 = vmatprep.subr.bf16.mxu1 %v5214_v29 }
 0x154   : > { %v3256_v51 = vrot.slane %v6305_v18, %v5511_v27  ;;  %v6671_v13 = vpack.c.bf16 %v3413_v52, %v3396_v7  ;;  %v6674_v48 = vsel %vm3594_vm6, %v3613_v4, %v3617_v33  ;;  %v1482_v12 = vmul.f32 %v6381_v21, %v6065_v61  ;;  %v5215_v7 = vld [vmem:[%s7321_s4 + $0x8] sm:$0xff]  }
 0x155   : > { %v3601_v25 = vor.u32 %v3600_v5, %v3596_v41  ;;  %v1868_v38 = vcombine.high %v1534_v19, %v1534_v19  ;;  %v1875_v23 = vrot.slane %v1534_v19, %v5511_v27  ;;  %v1532_v53 = vmax.f32 %v1509_v56, 0.0  ;;  %4924 = vmatpush3.bf16.msra.mxu0 %v5215_v7  ;;  %5089 = vmatpush3.bf16.msra.mxu1 %v5215_v7 }
 0x156   : > { %v6679_v45 = vpack.c.bf16 %v3256_v51, %v3256_v51  ;;  %v1798_v18 = vcombine.high %v6570_v44, %v6570_v44  ;;  %3693 = vrot.lane.b32.xlu0 %v6674_v48, %s5325_s19  ;;  %v3730_v34 = vrot.slane %v6456_v63, 1  ;;  %v1512_v52 = vadd.f32 %v6096_v49, %v1482_v12  ;;  %3769 = vrot.lane.b32.xlu1 %v6641_v22, %s5324_s24 }
 0x157   : > { %v1480_v21 = vmul.f32 %v6065_v61, %v6397_v17  ;;  %v3605_v43 = vrot.slane %v3603_v59, 1  ;;  %v1882_v50 = vrot.slane %v1868_v38, %v5511_v27  ;;  %v1883_v6 = vcombine.high %v1875_v23, %v1875_v23 }
 0x158   : > { %v1834_v15 = vcombine.high %v1532_v53, %v1532_v53  ;;  %v1841_v44 = vrot.slane %v1532_v53, %v5511_v27  ;;  %v7464_v37 = vrot.slane %v6086_v54, %v5711_v31  ;;  %v3731_v32 = vrot.slane %v6679_v45, 1 }
 0x159   : > { %v1535_v55 = vmax.f32 %v1512_v52, 0.0  ;;  %v3606_v17 = vsel %vm3594_vm6, %v3601_v25, %v3605_v43  ;;  %v7465_v1 = vrot.slane %v6060_v24, %v5711_v31  ;;  %v1510_v10 = vadd.f32 %v6096_v49, %v1480_v21  ;;  %v7471_v52 = vld [vmem:[#allocation12_spill] sm:$0xff] }
 0x15a   : > { %v3017_v3 = vmul.f32 %v7464_v37, %v1833_v11  ;;  %v1848_v4 = vrot.slane %v1834_v15, %v5511_v27  ;;  %3691 = vrot.lane.b32.xlu0 %v3606_v17, %s5325_s19  ;;  %v1849_v42 = vcombine.high %v1841_v44, %v1841_v44  ;;  %v7466_v11 = vrot.slane %v6086_v54, %v5714_v35  ;;  %v7474_v15 = vld [vmem:[#allocation14_spill] sm:$0xff]  ;;  %v5216_v17 = vld [vmem:[%s7321_s4 + $0x40] sm:$0xff]  }
 0x15b   : > { %v3026_v39 = vmul.f32 %v7465_v1, %v1875_v23  ;;  %v6708_v26 = vsel %vm3723_vm7, %v3730_v34, %v3731_v32  ;;  %v1885_v0 = vcombine.high %v1535_v55, %v1535_v55  ;;  %v1884_v33 = vcombine.high %v1882_v50, %v1882_v50  ;;  %v5217_v1 = vld [vmem:[%s7321_s4] sm:$0xff]   ;;  %4925 = vmatprep.subr.bf16.mxu0 %v5216_v17 }
 0x15c   : > { %v3018_v20 = vmul.f32 %v7466_v11, %v1841_v44  ;;  %v7467_v41 = vrot.slane %v6060_v24, %v5714_v35  ;;  %v1850_v59 = vcombine.high %v1848_v4, %v1848_v4  ;;  %v7468_v19 = vrot.slane %v6086_v54, %v5741_v36  ;;  %3752 = vrot.lane.b32.xlu1 %v6708_v26, %s5326_s25  ;;  %v7480_v11 = vld [vmem:[#allocation15_spill] sm:$0xff] }
 0x15d   : > { %v7469_v51 = vrot.slane %v6086_v54, %v5723_v58  ;;  %v1892_v38 = vrot.slane %v1535_v55, %v5511_v27  ;;  %v1899_v23 = vrot.slane %v1885_v0, %v5511_v27  ;;  %v7470_v53 = vcombine.low %v6444_v47, %v6447_v40  ;;  %5082 = vmatprep.subr.bf16.mxu1 %v5216_v17 }
 0x15e   : > { %v3027_v5 = vmul.f32 %v7467_v41, %v1883_v6  ;;  %v3020_v56 = vmul.f32 %v7468_v19, %v1848_v4  ;;  %v3421_v12 = vcombine.low %v3017_v3, %v3018_v20  ;;  %v7472_v21 = vrot.slane %v7471_v52, %v5711_v31  ;;  %3814 = vrot.lane.b32.xlu0 %v6456_v63, %s5326_s25 }
 0x15f   : > { %v3019_v25 = vmul.f32 %v7469_v51, %v1849_v42  ;;  %v6735_v34 = vpack.c.bf16 %v7470_v53, %v3314_v9  ;;  %v1533_v54 = vmax.f32 %v1510_v10, 0.0  ;;  %v7473_v6 = vcombine.high %v6418_v28, %v6418_v28  ;;  %v7478_v10 = vld [vmem:[#allocation13_spill] sm:$0xff]  ;;  %4926 = vmatpush3.bf16.msra.mxu0 %v5217_v1  ;;  %5090 = vmatpush3.bf16.msra.mxu1 %v5217_v1 }
 0x160   : > { %v6740_v43 = vmul.f32 %v7472_v21, %v1798_v18  ;;  %v7475_v44 = vrot.slane %v7474_v15, %v5711_v31  ;;  %v6751_v40 = vrot.slane %v3421_v12, %v5511_v27  ;;  %v1900_v57 = vcombine.high %v1892_v38, %v1892_v38 }
 0x161   : > { %v3422_v47 = vcombine.low %v3019_v25, %v3020_v56  ;;  %v1901_v2 = vcombine.high %v1899_v23, %v1899_v23  ;;  %v7476_v9 = vrot.slane %v6060_v24, %v5723_v58  ;;  %v7477_v28 = vrot.slane %v6060_v24, %v5741_v36  ;;  %v6792_v25 = vld [vmem:[%s7321_s4 + $0x88] sm:$0xff]  }
 0x162   : > { %v2989_v37 = vmul.f32 %v7475_v44, %v7473_v6  ;;  %v3462_v32 = vcombine.low %v3026_v39, %v3027_v5  ;;  %v1851_v55 = vcombine.high %v1533_v54, %v1533_v54  ;;  %v1858_v24 = vrot.slane %v1533_v54, %v5511_v27  ;;  %3799 = vrot.lane.b32.xlu0 %v6708_v26, %s5325_s19 }
 0x163   : > { %v3028_v18 = vmul.f32 %v7476_v9, %v1882_v50  ;;  %v3029_v3 = vmul.f32 %v7477_v28, %v1884_v33  ;;  %v3436_v4 = vrot.slane %v3422_v47, %v5511_v27  ;;  %v7479_v50 = vrot.slane %v7478_v10, %v5711_v31  ;;  %5035 = vmatprep.subr.bf16.mxu0 %v6792_v25 }
 0x164   : > { %v7481_v39 = vrot.slane %v7480_v11, %v5711_v31  ;;  %v7482_v0 = vrot.slane %v7478_v10, %v5723_v58  ;;  %v6777_v33 = vrot.slane %v1851_v55, %v5511_v27  ;;  %v3297_v7 = vrot.slane %v2989_v37, %v5511_v27 }
 0x165   : > { %v3030_v42 = vmul.f32 %v7479_v50, %v1892_v38  ;;  %v3437_v41 = vcombine.low %v6751_v40, %v3436_v4  ;;  %v7483_v5 = vrot.slane %v7478_v10, %v5714_v35  ;;  %v1866_v51 = vcombine.high %v1858_v24, %v1858_v24 }
 0x166   : > { %v3021_v20 = vmul.f32 %v7481_v39, %v1850_v59  ;;  %v3032_v29 = vmul.f32 %v7482_v0, %v1899_v23  ;;  %v7484_v59 = vrot.slane %v7478_v10, %v5741_v36  ;;  %v7485_v12 = vrot.slane %v7480_v11, %v5714_v35 }
 0x167   : > { %v3031_v19 = vmul.f32 %v7483_v5, %v1900_v57  ;;  %v7486_v23 = vrot.slane %v7480_v11, %v5741_v36  ;;  %v3581_v52 = vpack.c.bf16 %v3297_v7, %v3297_v7  ;;  %v3733_v21 = vrot.slane %v6641_v22, 1 }
 0x168   : > { %v3033_v56 = vmul.f32 %v7484_v59, %v1901_v2  ;;  %v3022_v38 = vmul.f32 %v7485_v12, %v1858_v24  ;;  %v3463_v54 = vcombine.low %v3028_v18, %v3029_v3  ;;  %v6803_v6 = vrot.slane %v3462_v32, %v5511_v27 }
 0x169   : > { %v3024_v53 = vmul.f32 %v7486_v23, %v6777_v33  ;;  %v7487_v15 = vrot.slane %v7480_v11, %v5723_v58  ;;  %v3734_v47 = vrot.slane %v3581_v52, 1  ;;  %v3622_v40 = vshll.u32 %v6456_v63, 16 }
 0x16a   : > { %v3438_v37 = vcombine.low %v3021_v20, %v3022_v38  ;;  %v3627_v57 = vshll.u32 %v6679_v45, 16  ;;  %v3479_v2 = vcombine.low %v3030_v42, %v3031_v19  ;;  %v3480_v9 = vcombine.low %v3032_v29, %v3033_v56  ;;  %v1445_v19 = vpop.f32.mrf.mxu0  ;;  %v7488_v56 = vld [vmem:[#allocation11_spill] sm:$0xff] }
 0x16b   : > { %v3023_v44 = vmul.f32 %v7487_v15, %v1866_v51  ;;  %v3634_v18 = vshll.u32 %v6641_v22, 16  ;;  %v6814_v32 = vsel %vm3723_vm7, %v3733_v21, %v3734_v47  ;;  %v3620_v55 = vshrl.u32 %v6456_v63, 16 }
 0x16c   : > { %v3446_v3 = vrot.slane %v3438_v37, %v5511_v27  ;;  %v3624_v17 = vrot.slane %v3622_v40, 1  ;;  %v6818_v1 = vrot.slane %v3463_v54, %v5511_v27  ;;  %3754 = vrot.lane.b32.xlu1 %v6814_v32, %s5326_s25  ;;  %3801 = vrot.lane.b32.xlu0 %v6814_v32, %s5325_s19  ;;  %v1485_v45 = vmul.f32 %v6410_v60, %v6065_v61  ;;  %v5222_v54 = vld [vmem:[%s7319_s2] ss:$0 sm:$0xff] }
 0x16d   : > { %v3439_v28 = vcombine.low %v3023_v44, %v3024_v53  ;;  %v3629_v50 = vrot.slane %v3627_v57, 1  ;;  %v3338_v42 = vrot.slane %v6485_v30, %v5511_v27  ;;  %v1483_v24 = vmul.f32 %v6065_v61, %v6423_v62 }
 0x16e   : > { %v3625_v10 = vor.u32 %v3624_v17, %v3620_v55  ;;  %v3636_v39 = vrot.slane %v3634_v18, 1  ;;  %v3639_v20 = vshll.u32 %v3581_v52, 16  ;;  %v1515_v0 = vadd.f32 %v6096_v49, %v1485_v45 }
 0x16f   : > { %v3453_v4 = vrot.slane %v3439_v28, %v5511_v27  ;;  %v3487_v29 = vrot.slane %v3479_v2, %v5511_v27  ;;  %v3494_v7 = vrot.slane %v3480_v9, %v5511_v27  ;;  %v1513_v60 = vadd.f32 %v6096_v49, %v1483_v24 }
 0x170   : > { %v6835_v5 = vsel %vm3594_vm6, %v3625_v10, %v3629_v50  ;;  %v3632_v61 = vshrl.u32 %v6641_v22, 16  ;;  %v1538_v62 = vmax.f32 %v1515_v0, 0.0  ;;  %v3583_v30 = vpack.c.bf16 %v3338_v42, %v3338_v42 }
 0x171   : > { %v3454_v11 = vcombine.low %v3446_v3, %v3453_v4  ;;  %3695 = vrot.lane.b32.xlu1 %v6835_v5, %s5325_s19  ;;  %3842 = vrot.lane.b32.xlu0 %v6835_v5, %s5324_s24  ;;  %v7489_v51 = vrot.slane %v7488_v56, %v5711_v31  ;;  %v1536_v38 = vmax.f32 %v1513_v60, 0.0  ;;  %v3646_v49 = vshll.u32 %v6735_v34, 16 }
 0x172   : > { %v3478_v53 = vcombine.low %v6803_v6, %v6818_v1  ;;  %v3637_v52 = vor.u32 %v3636_v39, %v3632_v61  ;;  %v3641_v21 = vrot.slane %v3639_v20, 1  ;;  %v1484_v15 = vmul.f32 %v5222_v54, %v1445_v19  ;;  %v5223_v1 = vld [vmem:[%s7320_s3] ss:$0 sm:$0xff] }
 0x173   : > { %v6838_v59 = vpack.c.bf16 %v3454_v11, %v3437_v41  ;;  %v3016_v12 = vmul.f32 %v7489_v51, %v6588_v46  ;;  %v7490_v41 = vld [vmem:[#allocation16_spill] sm:$0xff]  ;;  %v3736_v44 = vrot.slane %v6735_v34, 1  ;;  %v1902_v37 = vcombine.high %v1536_v38, %v1536_v38 }
 0x174   : > { %v2849_v23 = vrot.slane %v7490_v41, %v5723_v58  ;;  %v1909_v46 = vrot.slane %v1536_v38, %v5511_v27  ;;  %v3379_v47 = vrot.slane %v6740_v43, %v5511_v27  ;;  %v3495_v40 = vcombine.low %v3487_v29, %v3494_v7  ;;  %v7492_v29 = vld [vmem:[#allocation18_spill] sm:$0xff] }
 0x175   : > { %v1867_v57 = vcombine.high %v6777_v33, %v6777_v33  ;;  %3771 = vrot.lane.b32.xlu1 %v6735_v34, %s5324_s24  ;;  %3818 = vrot.lane.b32.xlu0 %v6735_v34, %s5326_s25  ;;  %v1942_v6 = vrot.slane %v1538_v62, %v5511_v27  ;;  %v3651_v2 = vshll.u32 %v3583_v30, 16  ;;  %v3737_v9 = vrot.slane %v3583_v30, 1 }
 0x176   : > { %v1916_v28 = vrot.slane %v1902_v37, %v5511_v27  ;;  %v1917_v18 = vcombine.high %v1909_v46, %v1909_v46  ;;  %v3648_v3 = vrot.slane %v3646_v49, 1  ;;  %v6870_v43 = vsel %vm3594_vm6, %v3637_v52, %v3641_v21 }
 0x177   : > { %v3644_v55 = vshrl.u32 %v6735_v34, 16  ;;  %v3739_v17 = vrot.slane %v6651_v14, 1  ;;  %v1514_v4 = vadd.f32 %v5223_v1, %v1484_v15  ;;  %v6878_v45 = vsel %vm3723_vm7, %v3736_v44, %v3737_v9 }
 0x178   : > { %v1918_v10 = vcombine.high %v1916_v28, %v1916_v28  ;;  %v3585_v50 = vpack.c.bf16 %v3379_v47, %v3379_v47  ;;  %v3658_v42 = vshll.u32 %v6651_v14, 16  ;;  %v1943_v24 = vcombine.high %v1942_v6, %v1942_v6 }
 0x179   : > { %3697 = vrot.lane.b32.xlu1 %v6870_v43, %s5325_s19  ;;  %v7491_v11 = vrot.slane %v7490_v41, %v5741_v36  ;;  %3844 = vrot.lane.b32.xlu0 %v6870_v43, %s5324_s24  ;;  %v3653_v20 = vrot.slane %v3651_v2, 1  ;;  %v1537_v0 = vmax.f32 %v1514_v4, 0.0  ;;  %v7493_v7 = vrot.slane %v7492_v29, %v5711_v31 }
 0x17a   : > { %v3649_v19 = vor.u32 %v3648_v3, %v3644_v55  ;;  %v3656_v61 = vshrl.u32 %v6651_v14, 16  ;;  %v3420_v62 = vrot.slane %v3016_v12, %v5511_v27  ;;  %v7496_v51 = vrot.slane %v7492_v29, %v5714_v35  ;;  %v7500_v3 = vld [vmem:[#allocation17_spill] sm:$0xff] }
 0x17b   : > { %v3042_v39 = vmul.f32 %v7491_v11, %v1942_v6  ;;  %v3035_v60 = vmul.f32 %v7493_v7, %v1917_v18  ;;  %v1919_v49 = vcombine.high %v1537_v0, %v1537_v0  ;;  %v1926_v52 = vrot.slane %v1537_v0, %v5511_v27 }
 0x17c   : > { %v3036_v38 = vmul.f32 %v7496_v51, %v1916_v28  ;;  %v7497_v21 = vrot.slane %v7492_v29, %v5723_v58  ;;  %v3740_v15 = vrot.slane %v3585_v50, 1  ;;  %v3660_v44 = vrot.slane %v3658_v42, 1 }
 0x17d   : > { %v3663_v37 = vshll.u32 %v3585_v50, 16  ;;  %v6904_v12 = vpack.c.bf16 %v3495_v40, %v3478_v53  ;;  %3756 = vrot.lane.b32.xlu1 %v6878_v45, %s5326_s25  ;;  %3803 = vrot.lane.b32.xlu0 %v6878_v45, %s5325_s19  ;;  %v1933_v47 = vrot.slane %v1919_v49, %v5511_v27  ;;  %v1934_v6 = vcombine.high %v1926_v52, %v1926_v52  ;;  %v7502_v40 = vld [vmem:[#allocation19_spill] sm:$0xff] }
 0x17e   : > { %v3037_v54 = vmul.f32 %v7497_v21, %v1918_v10  ;;  %v7498_v2 = vrot.slane %v7492_v29, %v5741_v36  ;;  %v7499_v28 = vmov 0.0   ;;  %v7501_v55 = vrot.slane %v7500_v3, %v5711_v31 }
 0x17f   : > { %v4818_v18 = vsel %vm2137_vm11, 1.0, %v7499_v28  ;;  %v7503_v1 = vrot.slane %v7502_v40, %v5711_v31  ;;  %v6922_v10 = vsel %vm3594_vm6, %v3649_v19, %v3653_v20  ;;  %v6924_v50 = vpack.c.bf16 %v3420_v62, %v3420_v62 }
 0x180   : > { %v3038_v9 = vmul.f32 %v7498_v2, %v1926_v52  ;;  %v3043_v53 = vmul.f32 %v7501_v55, %v1943_v24  ;;  %v1935_v42 = vcombine.high %v1933_v47, %v1933_v47  ;;  %v7504_v36 = vrot.slane %v7490_v41, %v5711_v31 }
 0x181   : > { %v3034_v4 = vmul.f32 %v7503_v1, %v1909_v46  ;;  %v7505_v0 = vrot.slane %v7490_v41, %v5714_v35  ;;  %v3503_v24 = vcombine.low %v3035_v60, %v3036_v38  ;;  %v6933_v30 = vsel %vm3723_vm7, %v3739_v17, %v3740_v15  ;;  %3820 = vrot.lane.b32.xlu1 %v6651_v14, %s5326_s25 }
 0x182   : > { %v3039_v11 = vmul.f32 %v7504_v36, %v1934_v6  ;;  %v3504_v7 = vcombine.low %v3037_v54, %v3038_v9  ;;  %v3742_v46 = vrot.slane %v6671_v13, 1  ;;  %v2737_v20 = vrot.slane %v4818_v18, %v5711_v31  ;;  %3846 = vrot.lane.b32.xlu0 %v6922_v10, %s5324_s24 }
 0x183   : > { %v3040_v29 = vmul.f32 %v7505_v0, %v1933_v47  ;;  %v3041_v35 = vmul.f32 %v2849_v23, %v1935_v42  ;;  %v3661_v62 = vor.u32 %v3660_v44, %v3656_v61  ;;  %v3665_v60 = vrot.slane %v3663_v37, 1 }
 0x184   : > { %v3518_v17 = vrot.slane %v3504_v7, %v5511_v27  ;;  %v3743_v56 = vrot.slane %v6924_v50, 1  ;;  %v3025_v31 = vmul.f32 %v2737_v20, %v1867_v57  ;;  %v3682_v51 = vshll.u32 %v6838_v59, 16 }
 0x185   : > { %v3520_v19 = vcombine.low %v3039_v11, %v3040_v29  ;;  %v3521_v38 = vcombine.low %v3041_v35, %v3042_v39  ;;  %v3680_v49 = vshrl.u32 %v6838_v59, 16  ;;  %v3502_v52 = vrot.slane %v3034_v4, %v5511_v27  ;;  %3773 = vrot.lane.b32.xlu1 %v6651_v14, %s5324_s24 }
 0x186   : > { %v3782_v58 = vshrl.u32 %v6904_v12, 16  ;;  %v3461_v41 = vrot.slane %v3025_v31, %v5511_v27  ;;  %v3684_v23 = vrot.slane %v3682_v51, 1  ;;  %v3784_v61 = vshll.u32 %v6904_v12, 16  ;;  %3805 = vrot.lane.b32.xlu0 %v6933_v30, %s5325_s19 }
 0x187   : > { %v3511_v21 = vrot.slane %v3503_v24, %v5511_v27  ;;  %v3591_v33 = vpack.c.bf16 %v3502_v52, %v3502_v52  ;;  %v3794_v57 = vrot.slane %v6904_v12, 1  ;;  %v3528_v39 = vrot.slane %v3520_v19, %v5511_v27 }
 0x188   : > { %v3535_v54 = vrot.slane %v3521_v38, %v5511_v27  ;;  %v3589_v15 = vpack.c.bf16 %v3461_v41, %v3461_v41  ;;  %v3745_v44 = vrot.slane %v6838_v59, 1  ;;  %v3786_v37 = vrot.slane %v3784_v61, 1 }
 0x189   : > { %v3519_v47 = vcombine.low %v3511_v21, %v3518_v17  ;;  %v3795_v6 = vrot.slane %v3591_v33, 1  ;;  %v3789_v2 = vshll.u32 %v3591_v33, 16  ;;  %v3543_v28 = vrot.slane %v3043_v53, %v5511_v27  ;;  %3699 = vrot.lane.b32.xlu1 %v6922_v10, %s5325_s19 }
 0x18a   : > { %v3536_v9 = vcombine.low %v3528_v39, %v3535_v54  ;;  %v3746_v18 = vrot.slane %v3589_v15, 1  ;;  %v3685_v3 = vor.u32 %v3684_v23, %v3680_v49  ;;  %v3687_v55 = vshll.u32 %v3589_v15, 16  ;;  %3822 = vrot.lane.b32.xlu0 %v6671_v13, %s5326_s25 }
 0x18b   : > { %v3787_v40 = vor.u32 %v3786_v37, %v3782_v58  ;;  %v6970_v1 = vsel %vm3723_vm7, %v3794_v57, %v3795_v6  ;;  %v3791_v4 = vrot.slane %v3789_v2, 1  ;;  %v3593_v36 = vpack.c.bf16 %v3543_v28, %v3543_v28 }
 0x18c   : > { %v3592_v42 = vpack.c.bf16 %v3536_v9, %v3519_v47  ;;  %v6973_v11 = vsel %vm3594_vm6, %v3661_v62, %v3665_v60  ;;  %v3670_v27 = vshll.u32 %v6671_v13, 16  ;;  %v6977_v53 = vsel %vm3723_vm7, %v3745_v44, %v3746_v18 }
 0x18d   : > { %v3689_v0 = vrot.slane %v3687_v55, 1  ;;  %v6980_v29 = vsel %vm3594_vm6, %v3787_v40, %v3791_v4  ;;  %v3838_v20 = vshll.u32 %v3593_v36, 16  ;;  %v6983_v35 = vsel %vm3723_vm7, %v3742_v46, %v3743_v56  ;;  %3848 = vrot.lane.b32.xlu1 %v6973_v11, %s5324_s24 }
 0x18e   : > { %v3831_v7 = vshrl.u32 %v3592_v42, 16  ;;  %v3833_v24 = vshll.u32 %v3592_v42, 16  ;;  %v3859_v62 = vrot.slane %v3592_v42, 1  ;;  %v3860_v60 = vrot.slane %v3593_v36, 1  ;;  %3807 = vrot.lane.b32.xlu0 %v6983_v35, %s5325_s19 }
 0x18f   : > { %v6986_v19 = vsel %vm3594_vm6, %v3685_v3, %v3689_v0  ;;  %v3840_v31 = vrot.slane %v3838_v20, 1  ;;  %v3668_v46 = vshrl.u32 %v6671_v13, 16  ;;  %v3672_v56 = vrot.slane %v3670_v27, 1 }
 0x190   : > { %v3835_v17 = vrot.slane %v3833_v24, 1  ;;  %v6993_v51 = vsel %vm3723_vm7, %v3859_v62, %v3860_v60  ;;  %v3675_v49 = vshll.u32 %v6924_v50, 16 }
 0x191   : > { %3758 = vrot.lane.b32.xlu1 %v6933_v30, %s5326_s25  ;;  %v3673_v58 = vor.u32 %v3672_v56, %v3668_v46 }
 0x192   : > { %v3836_v38 = vor.u32 %v3835_v17, %v3831_v7  ;;  %3824 = vrot.lane.b32.xlu0 %v6838_v59, %s5326_s25  ;;  %v3677_v41 = vrot.slane %v3675_v49, 1 }
 0x194   : > { %v3841_v52 = vsel %vm3594_vm6, %v3836_v38, %v3840_v31  ;;  %v7007_v23 = vsel %vm3594_vm6, %v3673_v58, %v3677_v41 }
 0x195   : > { %3775 = vrot.lane.b32.xlu1 %v6671_v13, %s5324_s24 }
 0x196   : > { %3826 = vrot.lane.b32.xlu0 %v6904_v12, %s5326_s25 }
 0x199   : > { %3701 = vrot.lane.b32.xlu1 %v6973_v11, %s5325_s19 }
 0x19a   : > { %3850 = vrot.lane.b32.xlu0 %v7007_v23, %s5324_s24 }
 0x19d   : > { %3760 = vrot.lane.b32.xlu1 %v6983_v35, %s5326_s25 }
 0x19e   : > { %3809 = vrot.lane.b32.xlu0 %v6977_v53, %s5325_s19 }
 0x1a1   : > { %3777 = vrot.lane.b32.xlu1 %v6838_v59, %s5324_s24 }
 0x1a2   : > { %3852 = vrot.lane.b32.xlu0 %v6986_v19, %s5324_s24 }
 0x1a5   : > { %3703 = vrot.lane.b32.xlu1 %v7007_v23, %s5325_s19 }
 0x1a6   : > { %3811 = vrot.lane.b32.xlu0 %v6970_v1, %s5325_s19 }
 0x1a9   : > { %3762 = vrot.lane.b32.xlu1 %v6977_v53, %s5326_s25 }
 0x1aa   : > { %3854 = vrot.lane.b32.xlu0 %v6980_v29, %s5324_s24 }
 0x1ad   : > { %3705 = vrot.lane.b32.xlu1 %v6986_v19, %s5325_s19 }
 0x1ae   : > { %3828 = vrot.lane.b32.xlu0 %v3592_v42, %s5326_s25  ;;  %v5219_v42 = vld [vmem:[%s7321_s4 + $0x80] sm:$0xff]   ;;  %s364_s25 = sand.u32 1, %s5292_s14  }
 0x1af   : > { %s4771_s12 = sshll.u32 %s364_s25, 7 }
 0x1b0   : > { %v3766_v50 = vpop.permute.xlu1 %3765  ;;  %s7199_s21 = scalar_lea.vmem [#allocation2], %s4771_s12  ;;  %s5327_s12 = smov [#allocation2]  }
 0x1b1   : > { %3779 = vrot.lane.b32.xlu1 %v6904_v12, %s5324_s24  ;;  %s4684_s17 = sshll.u32 %s7199_s21, 4  ;;  %s5228_s23 = sshll.u32 %s5327_s12, 4  ;;  %s7260_s17 = int_to_ptr.vmem [resolvable:$true] %s4684_s17  ;;  %s5229_s23 = int_to_ptr.vmem [resolvable:$false] %s5228_s23 }
 0x1b2   : > { %3856 = vrot.lane.b32.xlu0 %v3841_v52, %s5324_s24  ;;  %s5224_s30 = scalar_lea.vmem %s7260_s17, 2048  ;;  %s5230_s22 = scalar_lea.vmem %s5229_s23, 4096 }
 0x1b3   : > { %p5225_p13 = scmp.ne.s32.totalorder %s7260_s17, %s5224_s30  ;;  %p5231_p2 = scmp.lt.s32.totalorder %s7260_s17, %s5229_s23 }
 0x1b4   : > { %p5232_p4 = scmp.lt.s32.totalorder %s5230_s22, %s5224_s30 }
 0x1b5   : > { %p5226_p0 = pnand %p5225_p13, %p5436_p3 }
 0x1b6   : > { %p5233_p5 = por %p5232_p4, %p5231_p2 }
 0x1b7   : > { %p5227_p1 = pneg %p5226_p0 }
 0x1b9   : > { %p5234_p6 = pnand %p5233_p5, %p5227_p1 }
 0x1bc   : > { %v3751_v61 = vpop.permute.xlu1 %3750  ;;  %v3798_v21 = vpop.permute.xlu0 %3797 }
 0x1bd   : > { %v3923_v28 = vsel %vm3862_vm5, %v6674_v48, %v3798_v21 }
 0x1c0   : > { %v3768_v33 = vpop.permute.xlu1 %3767 }
 0x1c4   : > { %v3749_v57 = vpop.permute.xlu0 %3748  ;;  %v3817_v54 = vpop.permute.xlu1 %3816 }
 0x1c8   : > { %v3694_v39 = vpop.permute.xlu0 %3693  ;;  %v3770_v44 = vpop.permute.xlu1 %3769 }
 0x1c9   : > { %v3866_v48 = vsel %vm3862_vm5, %v6510_v8, %v3694_v39 }
 0x1ca   : > { %v3883_v7 = vsel %vm3879_vm13, %v3866_v48, %v3751_v61 }
 0x1cc   : > { %v3692_v15 = vpop.permute.xlu0 %3691 }
 0x1cd   : > { %v3864_v2 = vsel %vm3862_vm5, %v6620_v16, %v3692_v15 }
 0x1ce   : > { %v3753_v47 = vpop.permute.xlu1 %3752  ;;  %v3881_v18 = vsel %vm3879_vm13, %v3864_v2, %v3749_v57 }
 0x1cf   : > { %v3898_v16 = vsel %vm3896_vm14, %v3881_v18, %v3766_v50 }
 0x1d0   : > { %v3815_v37 = vpop.permute.xlu0 %3814 }
 0x1d1   : > { %v3946_v3 = vsel %vm3879_vm13, %v3923_v28, %v3815_v37 }
 0x1d4   : > { %v3800_v6 = vpop.permute.xlu0 %3799 }
 0x1d5   : > { %v3926_v0 = vsel %vm3862_vm5, %v6835_v5, %v3800_v6 }
 0x1d6   : > { %v3948_v62 = vsel %vm3879_vm13, %v3926_v0, %v3817_v54 }
 0x1de   : > { %v3755_v9 = vpop.permute.xlu1 %3754  ;;  %v3802_v12 = vpop.permute.xlu0 %3801 }
 0x1df   : > { %v3929_v17 = vsel %vm3862_vm5, %v6870_v43, %v3802_v12 }
 0x1e3   : > { %v3696_v55 = vpop.permute.xlu1 %3695  ;;  %v3843_v40 = vpop.permute.xlu0 %3842 }
 0x1e4   : > { %v3962_v4 = vsel %vm3896_vm14, %v3946_v3, %v3843_v40 }
 0x1e5   : > { %4185 = vmatprep.mubr.bf16.mxu0 %v3962_v4 }
 0x1e6   : > { %4186 = vmatmul.mubr.bf16.vlgmr.msra.gmra.mxu0 %v3898_v16 }
 0x1e7   : > { %v3772_v36 = vpop.permute.xlu1 %3771  ;;  %5036 = vmatpush3.bf16.msra.mxu0 %v6792_v25  ;;  %5039 = vmatprep.mubr.msk.bf16.mxu0 %vm3862_vm5, %v6708_v26  ;;  %v3819_v27 = vpop.permute.xlu0 %3818  ;;  %v3901_v25 = vsel %vm3896_vm14, %v3883_v7, %v3768_v33  ;;  %v3868_v26 = vsel %vm3862_vm5, %v6456_v63, %v3696_v55 }
 0x1e8   : > { %5037 = vmatprep.subr.bf16.mxu0 %v5219_v42  ;;  %v3885_v31 = vsel %vm3879_vm13, %v3868_v26, %v3753_v47  ;;  %v3950_v38 = vsel %vm3879_vm13, %v3929_v17, %v3819_v27 }
 0x1eb   : > { %v3698_v24 = vpop.permute.xlu1 %3697  ;;  %5038 = vmatpush3.bf16.msra.mxu0 %v5219_v42  ;;  %v3845_v20 = vpop.permute.xlu0 %3844 }
 0x1ec   : > { %v3965_v8 = vsel %vm3896_vm14, %v3948_v62, %v3845_v20  ;;  %v3870_v43 = vsel %vm3862_vm5, %v6641_v22, %v3698_v24 }
 0x1ed   : > { %4193 = vmatprep.mubr.bf16.mxu1 %v3965_v8  ;;  %v3887_v50 = vsel %vm3879_vm13, %v3870_v43, %v3755_v9 }
 0x1ee   : > { %4194 = vmatmul.mubr.bf16.vlgmr.msra.gmra.mxu1 %v3901_v25  ;;  %5040 = vmatmul.mubr.msk.bf16.vlgmr.msra.gmra.mxu0 %vm3862_vm5, %v6814_v32  ;;  %v3904_v32 = vsel %vm3896_vm14, %v3885_v31, %v3770_v44  ;;  %v3907_v22 = vsel %vm3896_vm14, %v3887_v50, %v3772_v36 }
 0x1ef   : > { %v3757_v5 = vpop.permute.xlu1 %3756  ;;  %v3804_v60 = vpop.permute.xlu0 %3803  ;;  %5043 = vmatprep.mubr.msk.bf16.mxu0 %vm3862_vm5, %v6878_v45 }
 0x1f0   : > { %v3932_v41 = vsel %vm3862_vm5, %v6922_v10, %v3804_v60  ;;  %v5220_v60 = vld [vmem:[%s7324_s7 + $0x8] sm:$0xff]  }
 0x1f1   : > { %5055 = vmatprep.subr.bf16.mxu1 %v5220_v60 }
 0x1f2   : > { %5056 = vmatpush3.bf16.msra.mxu1 %v5220_v60 }
 0x1f3   : > { %v3821_v46 = vpop.permute.xlu1 %3820 }
 0x1f4   : > { %v3847_v56 = vpop.permute.xlu0 %3846 }
 0x1f5   : > { %v3968_v49 = vsel %vm3896_vm14, %v3950_v38, %v3847_v56 }
 0x1f6   : > { %4201 = vmatprep.mubr.bf16.mxu1 %v3968_v49  ;;  %5044 = vmatmul.mubr.msk.bf16.gmra.mxu0 %vm3862_vm5, %v6933_v30  ;;  %v3952_v30 = vsel %vm3879_vm13, %v3932_v41, %v3821_v46 }
 0x1f7   : > { %4202 = vmatmul.mubr.bf16.gmra.mxu1 %v3904_v32  ;;  %v3774_v63 = vpop.permute.xlu1 %3773  ;;  %5047 = vmatprep.mubr.msk.bf16.mxu0 %vm3862_vm5, %v6983_v35 }
 0x1f8   : > { %v3806_v45 = vpop.permute.xlu0 %3805 }
 0x1f9   : > { %v3935_v54 = vsel %vm3862_vm5, %v6973_v11, %v3806_v45 }
 0x1fb   : > { %v3700_v52 = vpop.permute.xlu1 %3699 }
 0x1fc   : > { %v3823_v58 = vpop.permute.xlu0 %3822 }
 0x1fd   : > { %v3954_v15 = vsel %vm3879_vm13, %v3935_v54, %v3823_v58 }
 0x1fe   : > { %5048 = vmatmul.mubr.msk.bf16.gmra.mxu0 %vm3862_vm5, %v6977_v53  ;;  %v3872_v53 = vsel %vm3862_vm5, %v6735_v34, %v3700_v52 }
 0x1ff   : > { %v3849_v61 = vpop.permute.xlu1 %3848  ;;  %5051 = vmatprep.mubr.msk.bf16.mxu0 %vm3862_vm5, %v6970_v1  ;;  %v3889_v1 = vsel %vm3879_vm13, %v3872_v53, %v3757_v5 }
 0x200   : > { %v3808_v21 = vpop.permute.xlu0 %3807  ;;  %v3971_v35 = vsel %vm3896_vm14, %v3952_v30, %v3849_v61  ;;  %v3910_v6 = vsel %vm3896_vm14, %v3889_v1, %v3774_v63  ;;  %v7128_v63 = vld [vmem:[%s7322_s5] ss:$0 sm:$0xff] }
 0x201   : > { %4209 = vmatprep.mubr.bf16.mxu1 %v3971_v35  ;;  %v3938_v11 = vsel %vm3862_vm5, %v7007_v23, %v3808_v21  ;;  %v7134_v21 = vld [vmem:[%s7323_s6] ss:$0 sm:$0xff] }
 0x202   : > { %4210 = vmatmul.mubr.bf16.gmra.mxu1 %v3907_v22 }
 0x203   : > { %v3759_v33 = vpop.permute.xlu1 %3758 }
 0x204   : > { %v3825_v10 = vpop.permute.xlu0 %3824 }
 0x205   : > { %v3956_v12 = vsel %vm3879_vm13, %v3938_v11, %v3825_v10 }
 0x206   : > { %5052 = vmatmul.mubr.msk.bf16.gmra.mxu0 %vm3862_vm5, %v6993_v51 }
 0x207   : > { %v3776_v57 = vpop.permute.xlu1 %3775 }
 0x208   : > { %v3827_v39 = vpop.permute.xlu0 %3826 }
 0x20b   : > { %v3702_v44 = vpop.permute.xlu1 %3701 }
 0x20c   : > { %v3851_v37 = vpop.permute.xlu0 %3850  ;;  %v3874_v34 = vsel %vm3862_vm5, %v6651_v14, %v3702_v44 }
 0x20d   : > { %v3974_v47 = vsel %vm3896_vm14, %v3954_v15, %v3851_v37  ;;  %v3891_v9 = vsel %vm3879_vm13, %v3874_v34, %v3759_v33 }
 0x20e   : > { %4217 = vmatprep.mubr.bf16.mxu1 %v3974_v47  ;;  %v3913_v55 = vsel %vm3896_vm14, %v3891_v9, %v3776_v57 }
 0x20f   : > { %4218 = vmatmul.mubr.bf16.gmra.mxu1 %v3910_v6  ;;  %v3761_v51 = vpop.permute.xlu1 %3760 }
 0x210   : > { %v3810_v2 = vpop.permute.xlu0 %3809 }
 0x211   : > { %v3941_v14 = vsel %vm3862_vm5, %v6986_v19, %v3810_v2 }
 0x212   : > { %v3958_v36 = vsel %vm3879_vm13, %v3941_v14, %v3827_v39 }
 0x213   : > { %v3778_v28 = vpop.permute.xlu1 %3777 }
 0x214   : > { %v3853_v18 = vpop.permute.xlu0 %3852 }
 0x215   : > { %v3977_v3 = vsel %vm3896_vm14, %v3956_v12, %v3853_v18 }
 0x216   : > { %4225 = vmatprep.mubr.bf16.mxu1 %v3977_v3 }
 0x217   : > { %4226 = vmatmul.mubr.bf16.gmra.mxu1 %v3913_v55  ;;  %v3704_v40 = vpop.permute.xlu1 %3703 }
 0x218   : > { %v3812_v4 = vpop.permute.xlu0 %3811  ;;  %v3876_v23 = vsel %vm3862_vm5, %v6671_v13, %v3704_v40 }
 0x219   : > { %v3893_v42 = vsel %vm3879_vm13, %v3876_v23, %v3761_v51  ;;  %v3944_v13 = vsel %vm3862_vm5, %v6980_v29, %v3812_v4 }
 0x21a   : > { %v3916_v0 = vsel %vm3896_vm14, %v3893_v42, %v3778_v28 }
 0x21b   : > { %v3763_v16 = vpop.permute.xlu1 %3762 }
 0x21c   : > { %v3855_v48 = vpop.permute.xlu0 %3854 }
 0x21d   : > { %v3980_v27 = vsel %vm3896_vm14, %v3958_v36, %v3855_v48 }
 0x21e   : > { %4233 = vmatprep.mubr.bf16.mxu1 %v3980_v27 }
 0x21f   : > { %4234 = vmatmul.mubr.bf16.gmra.mxu1 %v3916_v0  ;;  %v3706_v7 = vpop.permute.xlu1 %3705 }
 0x220   : > { %v3829_v24 = vpop.permute.xlu0 %3828  ;;  %v3878_v19 = vsel %vm3862_vm5, %v6838_v59, %v3706_v7  ;;  %v5221_v59 = vld [vmem:[%s7324_s7] sm:$0xff]  }
 0x221   : > { %v3960_v20 = vsel %vm3879_vm13, %v3944_v13, %v3829_v24  ;;  %v3895_v26 = vsel %vm3879_vm13, %v3878_v19, %v3763_v16  ;;  %5057 = vmatprep.subr.bf16.mxu1 %v5221_v59 }
 0x222   : > { %5058 = vmatpush3.bf16.msra.mxu1 %v5221_v59 }
 0x223   : > { %v3780_v62 = vpop.permute.xlu1 %3779 }
 0x224   : > { %v3857_v8 = vpop.permute.xlu0 %3856  ;;  %v3919_v5 = vsel %vm3896_vm14, %v3895_v26, %v3780_v62 }
 0x225   : > { %v3983_v25 = vsel %vm3896_vm14, %v3960_v20, %v3857_v8 }
 0x226   : > { %4241 = vmatprep.mubr.bf16.mxu1 %v3983_v25 }
 0x227   : > { %4242 = vmatmul.mubr.bf16.gmra.mxu1 %v3919_v5 }
 0x2a6   : > { %v4927_v29 = vpop.f32.mrf.mxu0 }
 0x2a8   : > { %v4928_v17 = vpop.f32.mrf.mxu0 }
 0x2a9   : > { %v4929_v49 = vadd.f32 %v4928_v17, %v4927_v29 }
 0x2aa   : > { %v4930_v31 = vpop.f32.mrf.mxu0 }
 0x2ac   : > { %v4931_v38 = vpop.f32.mrf.mxu0 }
 0x2ad   : > { %v4932_v50 = vadd.f32 %v4931_v38, %v4930_v31 }
 0x2ae   : > { %v4933_v46 = vpop.f32.mrf.mxu1  ;;  %v5041_v56 = vpop.f32.mrf.mxu0 }
 0x2b0   : > { %v4934_v32 = vpop.f32.mrf.mxu1  ;;  %v4284_v45 = vpop.f32.mrf.mxu0 }
 0x2b1   : > { %v4935_v43 = vadd.f32 %v4934_v32, %v4933_v46  ;;  %v4285_v52 = vadd.f32 %v4929_v49, %v4284_v45 }
 0x2b2   : > { %v4936_v58 = vpop.f32.mrf.mxu1  ;;  %v5042_v41 = vpop.f32.mrf.mxu0 }
 0x2b3   : > { %v4293_v30 = vadd.f32 %v5041_v56, %v4935_v43  ;;  %v4354_v61 = vmul.f32 %v7128_v63, %v4285_v52 }
 0x2b4   : > { %v4937_v35 = vpop.f32.mrf.mxu1  ;;  %v4287_v22 = vpop.f32.mrf.mxu0 }
 0x2b5   : > { %v4356_v33 = vmul.f32 %v7128_v63, %v4293_v30  ;;  %v4938_v10 = vadd.f32 %v4937_v35, %v4936_v58  ;;  %v4288_v53 = vadd.f32 %v4932_v50, %v4287_v22  ;;  %v4377_v54 = vadd.f32 %v7134_v21, %v4354_v61 }
 0x2b6   : > { %v5045_v39 = vpop.f32.mrf.mxu0 }
 0x2b7   : > { %v4939_v57 = vpop.f32.mrf.mxu1  ;;  %v4296_v1 = vadd.f32 %v5042_v41, %v4938_v10  ;;  %v4355_v15 = vmul.f32 %v7128_v63, %v4288_v53  ;;  %v4379_v44 = vadd.f32 %v7134_v21, %v4356_v33  ;;  %v4393_v9 = vmax.f32 %v4377_v54, 0.0 }
 0x2b8   : > { %v4300_v47 = vpop.f32.mrf.mxu0 }
 0x2b9   : > { %v4940_v37 = vpop.f32.mrf.mxu1  ;;  %v4357_v6 = vmul.f32 %v7128_v63, %v4296_v1  ;;  %v4378_v34 = vadd.f32 %v7134_v21, %v4355_v15  ;;  %v4395_v3 = vmax.f32 %v4379_v44, 0.0 }
 0x2ba   : > { %v4941_v51 = vadd.f32 %v4940_v37, %v4939_v57  ;;  %v5046_v11 = vpop.f32.mrf.mxu0 }
 0x2bb   : > { %v4942_v2 = vpop.f32.mrf.mxu1  ;;  %v4380_v12 = vadd.f32 %v7134_v21, %v4357_v6  ;;  %v4394_v28 = vmax.f32 %v4378_v34, 0.0 }
 0x2bc   : > { %v4301_v18 = vadd.f32 %v4941_v51, %v4300_v47  ;;  %v4303_v42 = vpop.f32.mrf.mxu0 }
 0x2bd   : > { %v4943_v55 = vpop.f32.mrf.mxu1  ;;  %v4396_v40 = vmax.f32 %v4380_v12, 0.0  ;;  %v4409_v4 = vpack.c.bf16 %v4394_v28, %v4393_v9 }
 0x2be   : > { %v4358_v14 = vmul.f32 %v7128_v63, %v4301_v18  ;;  %v4944_v23 = vadd.f32 %v4943_v55, %v4942_v2  ;;  %v5049_v59 = vpop.f32.mrf.mxu0 }
 0x2bf   : > { %v4410_v16 = vpack.c.bf16 %v4396_v40, %v4395_v3  ;;  %5059 = vmatprep.mubr.msk.bf16.mxu1 %vm3862_vm5, %v4409_v4 }
 0x2c0   : > { %v4304_v48 = vadd.f32 %v4944_v23, %v4303_v42  ;;  %v4381_v36 = vadd.f32 %v7134_v21, %v4358_v14  ;;  %v4316_v38 = vpop.f32.mrf.mxu0 }
 0x2c1   : > { %5060 = vmatmul.mubr.msk.bf16.vlgmr.msra.gmra.mxu1 %vm3862_vm5, %v4410_v16 }
 0x2c2   : > { %v4359_v27 = vmul.f32 %v7128_v63, %v4304_v48  ;;  %v4945_v0 = vpop.f32.mrf.mxu1  ;;  %v4397_v19 = vmax.f32 %v4381_v36, 0.0  ;;  %v5050_v52 = vpop.f32.mrf.mxu0 }
 0x2c4   : > { %v4382_v7 = vadd.f32 %v7134_v21, %v4359_v27  ;;  %v4946_v24 = vpop.f32.mrf.mxu1  ;;  %v4319_v22 = vpop.f32.mrf.mxu0 }
 0x2c5   : > { %v4947_v20 = vadd.f32 %v4946_v24, %v4945_v0 }
 0x2c6   : > { %v4398_v13 = vmax.f32 %v4382_v7, 0.0  ;;  %v4948_v62 = vpop.f32.mrf.mxu1  ;;  %v5053_v1 = vpop.f32.mrf.mxu0 }
 0x2c7   : > { %v4309_v25 = vadd.f32 %v5045_v39, %v4947_v20 }
 0x2c8   : > { %v4411_v8 = vpack.c.bf16 %v4398_v13, %v4397_v19  ;;  %v4949_v26 = vpop.f32.mrf.mxu1 }
 0x2c9   : > { %v4360_v5 = vmul.f32 %v7128_v63, %v4309_v25  ;;  %v4950_v60 = vadd.f32 %v4949_v26, %v4948_v62 }
 0x2ca   : > { %5063 = vmatprep.mubr.msk.bf16.mxu1 %vm3862_vm5, %v4411_v8 }
 0x2cb   : > { %v4312_v29 = vadd.f32 %v5046_v11, %v4950_v60  ;;  %v4383_v17 = vadd.f32 %v7134_v21, %v4360_v5  ;;  %v4332_v11 = vpop.f32.mrf.mxu0 }
 0x2cd   : > { %v4361_v31 = vmul.f32 %v7128_v63, %v4312_v29  ;;  %v4399_v32 = vmax.f32 %v4383_v17, 0.0  ;;  %v5054_v4 = vpop.f32.mrf.mxu0 }
 0x2cf   : > { %v4951_v46 = vpop.f32.mrf.mxu1  ;;  %v4384_v56 = vadd.f32 %v7134_v21, %v4361_v31  ;;  %v4335_v7 = vpop.f32.mrf.mxu0 }
 0x2d1   : > { %v4952_v49 = vpop.f32.mrf.mxu1  ;;  %v4400_v45 = vmax.f32 %v4384_v56, 0.0 }
 0x2d2   : > { %v4953_v43 = vadd.f32 %v4952_v49, %v4951_v46 }
 0x2d3   : > { %v4954_v58 = vpop.f32.mrf.mxu1  ;;  %v4412_v50 = vpack.c.bf16 %v4400_v45, %v4399_v32 }
 0x2d4   : > { %v4317_v41 = vadd.f32 %v4953_v43, %v4316_v38 }
 0x2d5   : > { %v4955_v30 = vpop.f32.mrf.mxu1  ;;  %5064 = vmatmul.mubr.msk.bf16.gmra.mxu1 %vm3862_vm5, %v4412_v50 }
 0x2d6   : > { %v4362_v61 = vmul.f32 %v7128_v63, %v4317_v41  ;;  %v4956_v35 = vadd.f32 %v4955_v30, %v4954_v58  ;;  %v7178_v41 = vld [vmem:[%s7325_s8] ss:$0 sm:$0xff]  ;;  %v4869_v30 = vld [vmem:[%s5471_s18 + $0x31] sm:$0xff] }
 0x2d7   : > { %v4957_v33 = vpop.f32.mrf.mxu1 }
 0x2d8   : > { %v4320_v10 = vadd.f32 %v4956_v35, %v4319_v22  ;;  %v4385_v57 = vadd.f32 %v7134_v21, %v4362_v61 }
 0x2d9   : > { %v4958_v53 = vpop.f32.mrf.mxu1 }
 0x2da   : > { %v4363_v39 = vmul.f32 %v7128_v63, %v4320_v10  ;;  %v4959_v54 = vadd.f32 %v4958_v53, %v4957_v33  ;;  %v4401_v6 = vmax.f32 %v4385_v57, 0.0  ;;  %v4867_v33 = vld [vmem:[%s5471_s18 + $0x19] sm:$0xff] }
 0x2db   : > { %v4960_v15 = vpop.f32.mrf.mxu1 }
 0x2dc   : > { %v4386_v44 = vadd.f32 %v7134_v21, %v4363_v39  ;;  %v4325_v37 = vadd.f32 %v5049_v59, %v4959_v54  ;;  %v4870_v54 = vld [vmem:[%s5471_s18 + $0x39] sm:$0xff] }
 0x2dd   : > { %v4961_v47 = vpop.f32.mrf.mxu1 }
 0x2de   : > { %v4402_v34 = vmax.f32 %v4386_v44, 0.0  ;;  %v4364_v51 = vmul.f32 %v7128_v63, %v4325_v37  ;;  %v4962_v2 = vadd.f32 %v4961_v47, %v4960_v15 }
 0x2df   : > { %v4963_v9 = vpop.f32.mrf.mxu1 }
 0x2e0   : > { %v4328_v12 = vadd.f32 %v5050_v52, %v4962_v2  ;;  %v4413_v28 = vpack.c.bf16 %v4402_v34, %v4401_v6  ;;  %v4387_v3 = vadd.f32 %v7134_v21, %v4364_v51  ;;  %v4868_v6 = vld [vmem:[%s5471_s18 + $0x21] sm:$0xff] }
 0x2e1   : > { %v4964_v18 = vpop.f32.mrf.mxu1 }
 0x2e2   : > { %v4365_v55 = vmul.f32 %v7128_v63, %v4328_v12  ;;  %v4965_v40 = vadd.f32 %v4964_v18, %v4963_v9  ;;  %5067 = vmatprep.mubr.msk.bf16.mxu1 %vm3862_vm5, %v4413_v28  ;;  %v4403_v48 = vmax.f32 %v4387_v3, 0.0  ;;  %v4873_v3 = vld [vmem:[%s5471_s18 + $0x61] sm:$0xff] }
 0x2e3   : > { %v4966_v14 = vpop.f32.mrf.mxu1 }
 0x2e4   : > { %v4388_v23 = vadd.f32 %v7134_v21, %v4365_v55  ;;  %v4333_v42 = vadd.f32 %v4965_v40, %v4332_v11 }
 0x2e5   : > { %v4967_v16 = vpop.f32.mrf.mxu1 }
 0x2e6   : > { %v4404_v36 = vmax.f32 %v4388_v23, 0.0  ;;  %v4366_v27 = vmul.f32 %v7128_v63, %v4333_v42  ;;  %v4968_v0 = vadd.f32 %v4967_v16, %v4966_v14  ;;  %v4871_v14 = vld [vmem:[%s5471_s18 + $0x49] sm:$0xff] }
 0x2e7   : > { %v4969_v24 = vpop.f32.mrf.mxu1 }
 0x2e8   : > { %v4336_v19 = vadd.f32 %v4968_v0, %v4335_v7  ;;  %v4414_v13 = vpack.c.bf16 %v4404_v36, %v4403_v48  ;;  %v4389_v62 = vadd.f32 %v7134_v21, %v4366_v27  ;;  %v4874_v36 = vld [vmem:[%s5471_s18 + $0x69] sm:$0xff] }
 0x2e9   : > { %v4970_v20 = vpop.f32.mrf.mxu1 }
 0x2ea   : > { %v4367_v8 = vmul.f32 %v7128_v63, %v4336_v19  ;;  %v4971_v25 = vadd.f32 %v4970_v20, %v4969_v24  ;;  %5068 = vmatmul.mubr.msk.bf16.gmra.mxu1 %vm3862_vm5, %v4414_v13  ;;  %v4405_v29 = vmax.f32 %v4389_v62, 0.0  ;;  %v4872_v13 = vld [vmem:[%s5471_s18 + $0x51] sm:$0xff] }
 0x2eb   : > { %v4972_v26 = vpop.f32.mrf.mxu1 }
 0x2ec   : > { %v4390_v5 = vadd.f32 %v7134_v21, %v4367_v8  ;;  %v4341_v60 = vadd.f32 %v5053_v1, %v4971_v25 }
 0x2ed   : > { %v4973_v59 = vpop.f32.mrf.mxu1 }
 0x2ee   : > { %v4406_v17 = vmax.f32 %v4390_v5, 0.0  ;;  %v4368_v31 = vmul.f32 %v7128_v63, %v4341_v60  ;;  %v4974_v38 = vadd.f32 %v4973_v59, %v4972_v26 }
 0x2f0   : > { %v4344_v46 = vadd.f32 %v5054_v4, %v4974_v38  ;;  %v4415_v56 = vpack.c.bf16 %v4406_v17, %v4405_v29  ;;  %v4391_v49 = vadd.f32 %v7134_v21, %v4368_v31  ;;  %v4877_v29 = vld [vmem:[%s5471_s18 + $0x91] sm:$0xff] }
 0x2f2   : > { %v4369_v32 = vmul.f32 %v7128_v63, %v4344_v46  ;;  %5071 = vmatprep.mubr.msk.bf16.mxu1 %vm3862_vm5, %v4415_v56  ;;  %v4407_v43 = vmax.f32 %v4391_v49, 0.0  ;;  %v7184_v63 = vld [vmem:[%s7326_s9] ss:$0 sm:$0xff] }
 0x2f3   : > { %v4875_v46 = vld [vmem:[%s5471_s18 + $0x79] sm:$0xff] }
 0x2f4   : > { %v4392_v45 = vadd.f32 %v7134_v21, %v4369_v32 }
 0x2f6   : > { %v4408_v52 = vmax.f32 %v4392_v45, 0.0 }
 0x2f8   : > { %v4416_v58 = vpack.c.bf16 %v4408_v52, %v4407_v43  ;;  %v4878_v43 = vld [vmem:[%s5471_s18 + $0x99] sm:$0xff] }
 0x2fa   : > { %5072 = vmatmul.mubr.msk.bf16.gmra.mxu1 %vm3862_vm5, %v4416_v58 }
 0x381   : > { %v5061_v50 = vpop.f32.mrf.mxu1 }
 0x382   : > { %v4563_v21 = vmul.f32 %v5061_v50, %v7178_v41 }
 0x383   : > { %v4491_v61 = vpop.f32.mrf.mxu1 }
 0x384   : > { %v4586_v35 = vadd.f32 %v7184_v63, %v4563_v21  ;;  %v4561_v22 = vmul.f32 %v7178_v41, %v4491_v61  ;;  %v4876_v61 = vld [vmem:[%s5471_s18 + $0x81] sm:$0xff] }
 0x385   : > { %v5062_v10 = vpop.f32.mrf.mxu1 }
 0x386   : > { %v4621_v53 = vadd.f32 %v4869_v30, %v4586_v35  ;;  %v4584_v57 = vadd.f32 %v7184_v63, %v4561_v22  ;;  %v4564_v39 = vmul.f32 %v5062_v10, %v7178_v41 }
 0x387   : > { %v4494_v1 = vpop.f32.mrf.mxu1 }
 0x388   : > { %v4637_v15 = vmax.f32 %v4621_v53, 0.0  ;;  %v4619_v44 = vadd.f32 %v4867_v33, %v4584_v57  ;;  %v4587_v37 = vadd.f32 %v7184_v63, %v4564_v39  ;;  %v4562_v47 = vmul.f32 %v7178_v41, %v4494_v1  ;;  %v4881_v1 = vld [vmem:[%s5471_s18 + $0xc1] sm:$0xff] }
 0x38a   : > { %4653 = vst [vmem:[%s7199_s21 + $0x10] sm:$0xff] %v4637_v15  ;;  %v4635_v34 = vmax.f32 %v4619_v44, 0.0  ;;  %v4622_v51 = vadd.f32 %v4870_v54, %v4587_v37  ;;  %v4585_v2 = vadd.f32 %v7184_v63, %v4562_v47  ;;  %v4879_v47 = vld [vmem:[%s5471_s18 + $0xa9] sm:$0xff] }
 0x38c   : > { %4651 = vst [vmem:[%s7199_s21] sm:$0xff] %v4635_v34  ;;  %v4638_v11 = vmax.f32 %v4622_v51, 0.0  ;;  %v4620_v9 = vadd.f32 %v4868_v6, %v4585_v2 }
 0x38e   : > { %4654 = vst [vmem:[%s7199_s21 + $0x18] sm:$0xff] %v4638_v11  ;;  %v4636_v12 = vmax.f32 %v4620_v9, 0.0  ;;  %v4882_v11 = vld [vmem:[%s5471_s18 + $0xc9] sm:$0xff] }
 0x390   : > { %4652 = vst [vmem:[%s7199_s21 + $0x8] sm:$0xff] %v4636_v12 }
 0x395   : > { %v5065_v28 = vpop.f32.mrf.mxu1 }
 0x396   : > { %v4567_v18 = vmul.f32 %v5065_v28, %v7178_v41 }
 0x397   : > { %v4507_v55 = vpop.f32.mrf.mxu1 }
 0x398   : > { %v4590_v40 = vadd.f32 %v7184_v63, %v4567_v18  ;;  %v4565_v4 = vmul.f32 %v7178_v41, %v4507_v55  ;;  %v4880_v55 = vld [vmem:[%s5471_s18 + $0xb1] sm:$0xff]  ;;  %s7266_s18 = scalar_lea.sflag [#allocation3], %s364_s25 }
 0x399   : > { %v5066_v23 = vpop.f32.mrf.mxu1 }
 0x39a   : > { %v4625_v42 = vadd.f32 %v4873_v3, %v4590_v40  ;;  %v4588_v16 = vadd.f32 %v7184_v63, %v4565_v4  ;;  %v4568_v48 = vmul.f32 %v5066_v23, %v7178_v41 }
 0x39b   : > { %v4510_v27 = vpop.f32.mrf.mxu1 }
 0x39c   : > { %v4641_v0 = vmax.f32 %v4625_v42, 0.0  ;;  %v4623_v7 = vadd.f32 %v4871_v14, %v4588_v16  ;;  %v4591_v24 = vadd.f32 %v7184_v63, %v4568_v48  ;;  %v4566_v19 = vmul.f32 %v7178_v41, %v4510_v27 }
 0x39e   : > { %4657 = vst [vmem:[%s7199_s21 + $0x30] sm:$0xff] %v4641_v0  ;;  %v4639_v20 = vmax.f32 %v4623_v7, 0.0  ;;  %v4626_v62 = vadd.f32 %v4874_v36, %v4591_v24  ;;  %v4589_v8 = vadd.f32 %v7184_v63, %v4566_v19 }
 0x3a0   : > { %4655 = vst [vmem:[%s7199_s21 + $0x20] sm:$0xff] %v4639_v20  ;;  %v4642_v25 = vmax.f32 %v4626_v62, 0.0  ;;  %v4624_v26 = vadd.f32 %v4872_v13, %v4589_v8 }
 0x3a2   : > { %4658 = vst [vmem:[%s7199_s21 + $0x38] sm:$0xff] %v4642_v25  ;;  %v4640_v5 = vmax.f32 %v4624_v26, 0.0 }
 0x3a4   : > { %4656 = vst [vmem:[%s7199_s21 + $0x28] sm:$0xff] %v4640_v5 }
 0x3aa   : > { %v5069_v60 = vpop.f32.mrf.mxu1 }
 0x3ab   : > { %v4571_v59 = vmul.f32 %v5069_v60, %v7178_v41 }
 0x3ac   : > { %v4523_v17 = vpop.f32.mrf.mxu1 }
 0x3ad   : > { %v4594_v31 = vadd.f32 %v7184_v63, %v4571_v59  ;;  %v4569_v38 = vmul.f32 %v7178_v41, %v4523_v17 }
 0x3ae   : > { %v5070_v56 = vpop.f32.mrf.mxu1 }
 0x3af   : > { %v4629_v49 = vadd.f32 %v4877_v29, %v4594_v31  ;;  %v4592_v32 = vadd.f32 %v7184_v63, %v4569_v38  ;;  %v4572_v45 = vmul.f32 %v5070_v56, %v7178_v41 }
 0x3b0   : > { %v4526_v52 = vpop.f32.mrf.mxu1 }
 0x3b1   : > { %v4645_v58 = vmax.f32 %v4629_v49, 0.0  ;;  %v4627_v50 = vadd.f32 %v4875_v46, %v4592_v32  ;;  %v4595_v21 = vadd.f32 %v7184_v63, %v4572_v45  ;;  %v4570_v30 = vmul.f32 %v7178_v41, %v4526_v52 }
 0x3b3   : > { %4661 = vst [vmem:[%s7199_s21 + $0x50] sm:$0xff] %v4645_v58  ;;  %v4643_v35 = vmax.f32 %v4627_v50, 0.0  ;;  %v4630_v22 = vadd.f32 %v4878_v43, %v4595_v21  ;;  %v4593_v33 = vadd.f32 %v7184_v63, %v4570_v30 }
 0x3b5   : > { %4659 = vst [vmem:[%s7199_s21 + $0x40] sm:$0xff] %v4643_v35  ;;  %v4646_v10 = vmax.f32 %v4630_v22, 0.0  ;;  %v4628_v53 = vadd.f32 %v4876_v61, %v4593_v33 }
 0x3b7   : > { %4662 = vst [vmem:[%s7199_s21 + $0x58] sm:$0xff] %v4646_v10  ;;  %v4644_v57 = vmax.f32 %v4628_v53, 0.0 }
 0x3b9   : > { %4660 = vst [vmem:[%s7199_s21 + $0x48] sm:$0xff] %v4644_v57 }
 0x3ba   : > { %v5073_v39 = vpop.f32.mrf.mxu1 }
 0x3bb   : > { %v4575_v54 = vmul.f32 %v5073_v39, %v7178_v41 }
 0x3bc   : > { %v4539_v15 = vpop.f32.mrf.mxu1 }
 0x3bd   : > { %v4598_v44 = vadd.f32 %v7184_v63, %v4575_v54  ;;  %v4573_v37 = vmul.f32 %v7178_v41, %v4539_v15 }
 0x3be   : > { %v5074_v6 = vpop.f32.mrf.mxu1 }
 0x3bf   : > { %v4633_v34 = vadd.f32 %v4881_v1, %v4598_v44  ;;  %v4596_v51 = vadd.f32 %v7184_v63, %v4573_v37  ;;  %v4576_v2 = vmul.f32 %v5074_v6, %v7178_v41 }
 0x3c0   : > { %v4542_v9 = vpop.f32.mrf.mxu1 }
 0x3c1   : > { %v4649_v12 = vmax.f32 %v4633_v34, 0.0  ;;  %v4631_v28 = vadd.f32 %v4879_v47, %v4596_v51  ;;  %v4599_v18 = vadd.f32 %v7184_v63, %v4576_v2  ;;  %v4574_v3 = vmul.f32 %v7178_v41, %v4542_v9 }
 0x3c3   : > { %4665 = vst [vmem:[%s7199_s21 + $0x70] sm:$0xff] %v4649_v12  ;;  %v4647_v40 = vmax.f32 %v4631_v28, 0.0  ;;  %v4634_v4 = vadd.f32 %v4882_v11, %v4599_v18  ;;  %v4597_v14 = vadd.f32 %v7184_v63, %v4574_v3 }
 0x3c5   : > { %4663 = vst [vmem:[%s7199_s21 + $0x60] sm:$0xff] %v4647_v40  ;;  %v4650_v23 = vmax.f32 %v4634_v4, 0.0  ;;  %v4632_v42 = vadd.f32 %v4880_v55, %v4597_v14 }
 0x3c7   : > { %4666 = vst [vmem:[%s7199_s21 + $0x78] sm:$0xff] %v4650_v23  ;;  %v4648_v41 = vmax.f32 %v4632_v42, 0.0 }
 0x3c9   : > { %4664 = vst [vmem:[%s7199_s21 + $0x68] sm:$0xff] %v4648_v41 }
 0x3ca   : > { %5237 = shalt.err (!%p5234_p6)
}
 0x3cb   : > { %s5238_s25 = scalar_lea.hbm %s7258_s29, 2048  ;;  %s5242_s16 = scalar_lea.hbm %s7327_s10, 8192 }
 0x3cc   : > { %p5239_p7 = scmp.ne.s32.totalorder %s7258_s29, %s5238_s25  ;;  %p5243_p11 = scmp.lt.s32.totalorder %s7258_s29, %s7327_s10 }
 0x3cd   : > { %p5244_p12 = scmp.lt.s32.totalorder %s5242_s16, %s5238_s25 }
 0x3ce   : > { %p5240_p9 = pnand %p5239_p7, %p5436_p3 }
 0x3cf   : > { %p5245_p13 = por %p5244_p12, %p5243_p11 }
 0x3d0   : > { %p5241_p10 = pneg %p5240_p9 }
 0x3d2   : > { %p5246_p0 = pnand %p5245_p13, %p5241_p10 }
 0x3d4   : > { %5249 = shalt.err (!%p5246_p0)
}
 0x3d5   : > { %s5328_s30 = smov 128   ;;  %s5329_s12 = smov 8  }
 0x3d6   : > { %5092 = dma.vmem_to_hbm [thread:$0]  (%p5436_p3), %s7260_s17, 2048, %s7258_s29, %s7266_s18, %s5328_s30, %s5328_s30, %s5329_s12  }
 0x3d7 PF: > { %p5098_p1 = scmp.ge.s32.totalorder %s5316_s20, 2  ;;  %s4699_s23 = sand.u32 1, %s5288_s13  }
 0x3d8   : > { %s4700_s22 = scalar_lea.sflag [#allocation3], %s4699_s23 }
 0x3d9   : > { %p5095_p2 = pnand %p5098_p1, %p5445_p8 }
 0x3db   : > { %p5096_p4 = pneg %p5095_p2 }
 0x3dd   : > { %5283 = dma.done.wait (%p5096_p4), %s4700_s22, 2048  }
 0x3de   : > { %5285 = vsyncadd (%p5096_p4), %s4700_s22, 4294965248  ;;  %s23_s20 = sadd.s32 1, %s5316_s20   ;;  %s7506_s16 = sld [smem:[#allocation5_spill]] }
 0x3df   : > { %p20_p5 = scmp.ge.s32.totalorder %s23_s20, 6   ;;  %s7507_s17 = sld [smem:[#allocation6_spill]] }
 0x3e0   : > { %s7508_s18 = sld [smem:[#allocation7_spill]]  ;;  %s7510_s13 = smov %s5292_s14 }
 0x3e1   : > { %s7509_s19 = sld [smem:[#allocation8_spill]]  ;;  %s7511_s14 = smov %s5296_s15 }
 0x3e2   : > { %s7512_s15 = smov %s5454_s11  ;;  %22 = sbr.rel (!%p20_p5) target bundleno = 5 (0x5), region = 97 }
 0x3e7   :  { %4705 = vsyncpa [#allocation3], 1 }
 0x3e8   :  { %4707 = vsyncpa [#allocation3 + $0x1], 1 }

</bundles_post_ra>
